<compile_context>
chip_gen: v7x
topology: tpu7x:2x2x1
jax: 0.10.0
libtpu: 0.0.40
codegen_flags: <defaults>
</compile_context>

<pallas_src>
import jax
import jax.numpy as jnp
from jax import lax
from jax.experimental import pallas as pl
from jax.experimental.pallas import tpu as pltpu


def dan_kernel(tok_ref, emb_ref, w1_ref, b1_ref, w2_ref, b2_ref,
               out_ref, avg_ref):
    """One grid step = one batch tile of B_TILE rows (whole sequence per row).

    tok_ref : (B, S) int32 SMEM (scalar prefetch) -- full token table.
    emb_ref : (V, D) f32 VMEM -- whole embedding table, resident across the grid.
    w1_ref  : (D, H) bf16 ; b1_ref : (1, H) f32
    w2_ref  : (H, C) bf16 ; b2_ref : (1, C) f32
    out_ref : (B_TILE, C) f32 -- one contiguous slab per tile.
    avg_ref : (B_TILE, D) f32 VMEM scratch -- average-embedding slab for the tile.
    """
    tile = pl.program_id(0)
    b_tile, d = avg_ref.shape
    v = emb_ref.shape[0]
    seq = tok_ref.shape[1]
    inv_s = 1.0 / seq

    # ---- sequence mean: register-carried sum per row, one store per row ----
    for bi in range(b_tile):                           # static, unrolled over tile
        b = tile * b_tile + bi

        def body(si, acc):
            tok = jnp.clip(tok_ref[b, si], 0, v - 1)   # SMEM scalar read (+ clamp)
            return acc + emb_ref[pl.ds(tok, 1), :].astype(jnp.float32)

        acc = lax.fori_loop(0, seq, body,
                            jnp.zeros((1, d), jnp.float32), unroll=True)
        avg_ref[pl.ds(bi, 1), :] = acc * inv_s         # (1, D) write, once per row

    # ---- batched fc1 + ReLU + fc2 + log_softmax, once per tile ----
    avg = avg_ref[...]                                                 # (B_TILE, D) f32
    h = jnp.dot(avg.astype(jnp.bfloat16), w1_ref[...],
                preferred_element_type=jnp.float32) + b1_ref[...]      # (B_TILE, H)
    h = jnp.maximum(h, 0.0)
    logits = jnp.dot(h.astype(jnp.bfloat16), w2_ref[...],
                     preferred_element_type=jnp.float32) + b2_ref[...]  # (B_TILE, C)

    # log_softmax over the class dim (dim=1 in the PyTorch module).
    m = jnp.max(logits, axis=1, keepdims=True)
    shifted = logits - m
    lse = jnp.log(jnp.sum(jnp.exp(shifted), axis=1, keepdims=True))
    out_ref[...] = (shifted - lse).astype(out_ref.dtype)               # slab store


def rand_dan_forward(tokens, emb, w1, b1, w2, b2, *, b_tile=8):
    tokens = tokens.astype(jnp.int32)                  # mirrors x.long()
    B, S = tokens.shape
    V, D = emb.shape
    H = w1.shape[1]
    C = w2.shape[1]

    if B % b_tile != 0:
        b_tile = B       # TODO(synk): pad the batch for B not divisible by the tile.
    n_tiles = B // b_tile

    # bf16 only for MXU operands (halves weight HBM traffic / VMEM residency);
    # biases, embedding table and all elementwise math stay f32.
    w1 = w1.astype(jnp.bfloat16)
    w2 = w2.astype(jnp.bfloat16)
    b1 = b1.reshape(1, H).astype(jnp.float32)
    b2 = b2.reshape(1, C).astype(jnp.float32)

    cost = pl.CostEstimate(
        flops=2 * B * S * D + 2 * B * D * H + 2 * B * H * C + 8 * B * C,
        transcendentals=(C + 1) * B,                   # exp x C + log per row
        bytes_accessed=(tokens.size * 4                # token ids
                        + emb.size * 4                 # table DMA'd once
                        + w1.size * 2 + w2.size * 2
                        + (b1.size + b2.size) * 4
                        + B * C * 4),                  # output
    )

    # NOTE: total VMEM here is tiny (<32 KiB); at realistic V/D/H sizes keep the
    # table/weights bf16 and raise vmem_limit_bytes explicitly (v7x: 64 MiB phys).
    out = pl.pallas_call(
        dan_kernel,
        out_shape=jax.ShapeDtypeStruct((B, C), jnp.float32),
        grid_spec=pltpu.PrefetchScalarGridSpec(
            num_scalar_prefetch=1,                     # tokens -> SMEM
            grid=(n_tiles,),
            in_specs=[
                pl.BlockSpec((V, D), lambda i, tok: (0, 0)),   # resident emb table
                pl.BlockSpec((D, H), lambda i, tok: (0, 0)),
                pl.BlockSpec((1, H), lambda i, tok: (0, 0)),
                pl.BlockSpec((H, C), lambda i, tok: (0, 0)),
                pl.BlockSpec((1, C), lambda i, tok: (0, 0)),
            ],
            out_specs=pl.BlockSpec((b_tile, C), lambda i, tok: (i, 0)),
            scratch_shapes=[pltpu.VMEM((b_tile, D), jnp.float32)],
        ),
        compiler_params=pltpu.CompilerParams(
            dimension_semantics=("parallel",)),        # v7x: each TC gets a tile
        cost_estimate=cost,
    )(tokens, emb, w1, b1, w2, b2)

    return out


if __name__ == "__main__":
    # Small, deterministic configuration consistent with the module's __init__.
    # batch=16 gives 2 batch tiles of 8 rows (sublane-aligned, megacore-shardable).
    vocab_size, embedding_dim, hidden_size = 64, 32, 32
    batch, seq = 16, 8

    key = jax.random.PRNGKey(0)
    k_tok, k_emb, k_w1, k_b1, k_w2, k_b2 = jax.random.split(key, 6)

    tokens = jax.random.randint(k_tok, (batch, seq), 0, vocab_size, dtype=jnp.int32)
    emb = jax.random.normal(k_emb, (vocab_size, embedding_dim), jnp.float32)
    w1 = jax.random.normal(k_w1, (embedding_dim, hidden_size), jnp.float32) * 0.1
    b1 = jax.random.normal(k_b1, (1, hidden_size), jnp.float32) * 0.1
    w2 = jax.random.normal(k_w2, (hidden_size, 2), jnp.float32) * 0.1
    b2 = jax.random.normal(k_b2, (1, 2), jnp.float32) * 0.1

    out = rand_dan_forward(tokens, emb, w1, b1, w2, b2)
    out = jax.block_until_ready(out)

    # Pure-f32 JAX reference.  The kernel uses bf16 MXU operands (f32 accum),
    # which perturbs results at the ~1e-3 level, so compare with a relaxed tol.
    ref_avg = jnp.mean(emb[tokens], axis=1)
    ref_h = jnp.maximum(ref_avg @ w1 + b1, 0.0)
    ref_logits = ref_h @ w2 + b2
    ref = jax.nn.log_softmax(ref_logits, axis=1)
    assert jnp.allclose(out, ref, atol=2e-2, rtol=2e-2), "mismatch vs reference"

    print("KERNEL_OK")
</pallas_src>

<mosaic_0001>
module attributes {stable_mosaic.version = 11 : i64} {
  func.func @dan_kernel(%arg0: i32, %arg1: memref<16x8xi32, #tpu.memory_space<smem>>, %arg2: memref<64x32xf32, #tpu.memory_space<vmem>>, %arg3: memref<32x32xbf16, #tpu.memory_space<vmem>>, %arg4: memref<1x32xf32, #tpu.memory_space<vmem>>, %arg5: memref<32x2xbf16, #tpu.memory_space<vmem>>, %arg6: memref<1x2xf32, #tpu.memory_space<vmem>>, %arg7: memref<8x2xf32, #tpu.memory_space<vmem>>, %arg8: memref<8x32xf32, #tpu.memory_space<vmem>>) attributes {dimension_semantics = [#tpu.dimension_semantics<parallel>], iteration_bounds = array<i64: 2>, scalar_prefetch = 1 : i64, scratch_operands = 1 : i64, tpu.core_type = #tpu.core_type<tc>, window_params = [{pipeline_mode = #tpu.pipeline_mode<synchronous>, transform_indices = @transform_0, window_bounds = array<i64: 64, 32>}, {pipeline_mode = #tpu.pipeline_mode<synchronous>, transform_indices = @transform_1, window_bounds = array<i64: 32, 32>}, {pipeline_mode = #tpu.pipeline_mode<synchronous>, transform_indices = @transform_2, window_bounds = array<i64: 1, 32>}, {pipeline_mode = #tpu.pipeline_mode<synchronous>, transform_indices = @transform_3, window_bounds = array<i64: 32, 2>}, {pipeline_mode = #tpu.pipeline_mode<synchronous>, transform_indices = @transform_4, window_bounds = array<i64: 1, 2>}, {transform_indices = @transform_5, window_bounds = array<i64: 8, 2>}]} {
    %c8_i32 = arith.constant 8 : i32
    %0 = arith.muli %arg0, %c8_i32 : i32
    %c0_i32 = arith.constant 0 : i32
    %1 = arith.addi %0, %c0_i32 : i32
    %cst = arith.constant 0.000000e+00 : f32
    %2 = vector.broadcast %cst : f32 to vector<1x32xf32>
    %c0_i32_0 = arith.constant 0 : i32
    %3 = arith.index_cast %1 : i32 to index
    %4 = arith.index_cast %c0_i32_0 : i32 to index
    %5 = memref.load %arg1[%3, %4] : memref<16x8xi32, #tpu.memory_space<smem>>
    %c0_i32_1 = arith.constant 0 : i32
    %c63_i32 = arith.constant 63 : i32
    %6 = arith.maxsi %c0_i32_1, %5 : i32
    %7 = arith.minsi %c63_i32, %6 : i32
    %8 = arith.index_cast %7 : i32 to index
    %c0 = arith.constant 0 : index
    %9 = vector.load %arg2[%8, %c0] : memref<64x32xf32, #tpu.memory_space<vmem>>, vector<1x32xf32>
    %10 = arith.addf %2, %9 : vector<1x32xf32>
    %c1_i32 = arith.constant 1 : i32
    %11 = arith.index_cast %1 : i32 to index
    %12 = arith.index_cast %c1_i32 : i32 to index
    %13 = memref.load %arg1[%11, %12] : memref<16x8xi32, #tpu.memory_space<smem>>
    %c0_i32_2 = arith.constant 0 : i32
    %c63_i32_3 = arith.constant 63 : i32
    %14 = arith.maxsi %c0_i32_2, %13 : i32
    %15 = arith.minsi %c63_i32_3, %14 : i32
    %16 = arith.index_cast %15 : i32 to index
    %c0_4 = arith.constant 0 : index
    %17 = vector.load %arg2[%16, %c0_4] : memref<64x32xf32, #tpu.memory_space<vmem>>, vector<1x32xf32>
    %18 = arith.addf %10, %17 : vector<1x32xf32>
    %c2_i32 = arith.constant 2 : i32
    %19 = arith.index_cast %1 : i32 to index
    %20 = arith.index_cast %c2_i32 : i32 to index
    %21 = memref.load %arg1[%19, %20] : memref<16x8xi32, #tpu.memory_space<smem>>
    %c0_i32_5 = arith.constant 0 : i32
    %c63_i32_6 = arith.constant 63 : i32
    %22 = arith.maxsi %c0_i32_5, %21 : i32
    %23 = arith.minsi %c63_i32_6, %22 : i32
    %24 = arith.index_cast %23 : i32 to index
    %c0_7 = arith.constant 0 : index
    %25 = vector.load %arg2[%24, %c0_7] : memref<64x32xf32, #tpu.memory_space<vmem>>, vector<1x32xf32>
    %26 = arith.addf %18, %25 : vector<1x32xf32>
    %c3_i32 = arith.constant 3 : i32
    %27 = arith.index_cast %1 : i32 to index
    %28 = arith.index_cast %c3_i32 : i32 to index
    %29 = memref.load %arg1[%27, %28] : memref<16x8xi32, #tpu.memory_space<smem>>
    %c0_i32_8 = arith.constant 0 : i32
    %c63_i32_9 = arith.constant 63 : i32
    %30 = arith.maxsi %c0_i32_8, %29 : i32
    %31 = arith.minsi %c63_i32_9, %30 : i32
    %32 = arith.index_cast %31 : i32 to index
    %c0_10 = arith.constant 0 : index
    %33 = vector.load %arg2[%32, %c0_10] : memref<64x32xf32, #tpu.memory_space<vmem>>, vector<1x32xf32>
    %34 = arith.addf %26, %33 : vector<1x32xf32>
    %c4_i32 = arith.constant 4 : i32
    %35 = arith.index_cast %1 : i32 to index
    %36 = arith.index_cast %c4_i32 : i32 to index
    %37 = memref.load %arg1[%35, %36] : memref<16x8xi32, #tpu.memory_space<smem>>
    %c0_i32_11 = arith.constant 0 : i32
    %c63_i32_12 = arith.constant 63 : i32
    %38 = arith.maxsi %c0_i32_11, %37 : i32
    %39 = arith.minsi %c63_i32_12, %38 : i32
    %40 = arith.index_cast %39 : i32 to index
    %c0_13 = arith.constant 0 : index
    %41 = vector.load %arg2[%40, %c0_13] : memref<64x32xf32, #tpu.memory_space<vmem>>, vector<1x32xf32>
    %42 = arith.addf %34, %41 : vector<1x32xf32>
    %c5_i32 = arith.constant 5 : i32
    %43 = arith.index_cast %1 : i32 to index
    %44 = arith.index_cast %c5_i32 : i32 to index
    %45 = memref.load %arg1[%43, %44] : memref<16x8xi32, #tpu.memory_space<smem>>
    %c0_i32_14 = arith.constant 0 : i32
    %c63_i32_15 = arith.constant 63 : i32
    %46 = arith.maxsi %c0_i32_14, %45 : i32
    %47 = arith.minsi %c63_i32_15, %46 : i32
    %48 = arith.index_cast %47 : i32 to index
    %c0_16 = arith.constant 0 : index
    %49 = vector.load %arg2[%48, %c0_16] : memref<64x32xf32, #tpu.memory_space<vmem>>, vector<1x32xf32>
    %50 = arith.addf %42, %49 : vector<1x32xf32>
    %c6_i32 = arith.constant 6 : i32
    %51 = arith.index_cast %1 : i32 to index
    %52 = arith.index_cast %c6_i32 : i32 to index
    %53 = memref.load %arg1[%51, %52] : memref<16x8xi32, #tpu.memory_space<smem>>
    %c0_i32_17 = arith.constant 0 : i32
    %c63_i32_18 = arith.constant 63 : i32
    %54 = arith.maxsi %c0_i32_17, %53 : i32
    %55 = arith.minsi %c63_i32_18, %54 : i32
    %56 = arith.index_cast %55 : i32 to index
    %c0_19 = arith.constant 0 : index
    %57 = vector.load %arg2[%56, %c0_19] : memref<64x32xf32, #tpu.memory_space<vmem>>, vector<1x32xf32>
    %58 = arith.addf %50, %57 : vector<1x32xf32>
    %c7_i32 = arith.constant 7 : i32
    %59 = arith.index_cast %1 : i32 to index
    %60 = arith.index_cast %c7_i32 : i32 to index
    %61 = memref.load %arg1[%59, %60] : memref<16x8xi32, #tpu.memory_space<smem>>
    %c0_i32_20 = arith.constant 0 : i32
    %c63_i32_21 = arith.constant 63 : i32
    %62 = arith.maxsi %c0_i32_20, %61 : i32
    %63 = arith.minsi %c63_i32_21, %62 : i32
    %64 = arith.index_cast %63 : i32 to index
    %c0_22 = arith.constant 0 : index
    %65 = vector.load %arg2[%64, %c0_22] : memref<64x32xf32, #tpu.memory_space<vmem>>, vector<1x32xf32>
    %66 = arith.addf %58, %65 : vector<1x32xf32>
    %c8_i32_23 = arith.constant 8 : i32
    %cst_24 = arith.constant 1.250000e-01 : f32
    %67 = vector.broadcast %cst_24 : f32 to vector<1x32xf32>
    %68 = arith.mulf %66, %67 : vector<1x32xf32>
    %c0_25 = arith.constant 0 : index
    %c0_26 = arith.constant 0 : index
    %69 = vector.load %arg8[%c0_25, %c0_26] : memref<8x32xf32, #tpu.memory_space<vmem>>, vector<1x32xf32>
    tpu.vector_store %arg8[%c0_25, %c0_26], %68 {strides = array<i32>} : memref<8x32xf32, #tpu.memory_space<vmem>>, vector<1x32xf32>,
    %c8_i32_27 = arith.constant 8 : i32
    %70 = arith.muli %arg0, %c8_i32_27 : i32
    %c1_i32_28 = arith.constant 1 : i32
    %71 = arith.addi %70, %c1_i32_28 : i32
    %cst_29 = arith.constant 0.000000e+00 : f32
    %72 = vector.broadcast %cst_29 : f32 to vector<1x32xf32>
    %c0_i32_30 = arith.constant 0 : i32
    %73 = arith.index_cast %71 : i32 to index
    %74 = arith.index_cast %c0_i32_30 : i32 to index
    %75 = memref.load %arg1[%73, %74] : memref<16x8xi32, #tpu.memory_space<smem>>
    %c0_i32_31 = arith.constant 0 : i32
    %c63_i32_32 = arith.constant 63 : i32
    %76 = arith.maxsi %c0_i32_31, %75 : i32
    %77 = arith.minsi %c63_i32_32, %76 : i32
    %78 = arith.index_cast %77 : i32 to index
    %c0_33 = arith.constant 0 : index
    %79 = vector.load %arg2[%78, %c0_33] : memref<64x32xf32, #tpu.memory_space<vmem>>, vector<1x32xf32>
    %80 = arith.addf %72, %79 : vector<1x32xf32>
    %c1_i32_34 = arith.constant 1 : i32
    %81 = arith.index_cast %71 : i32 to index
    %82 = arith.index_cast %c1_i32_34 : i32 to index
    %83 = memref.load %arg1[%81, %82] : memref<16x8xi32, #tpu.memory_space<smem>>
    %c0_i32_35 = arith.constant 0 : i32
    %c63_i32_36 = arith.constant 63 : i32
    %84 = arith.maxsi %c0_i32_35, %83 : i32
    %85 = arith.minsi %c63_i32_36, %84 : i32
    %86 = arith.index_cast %85 : i32 to index
    %c0_37 = arith.constant 0 : index
    %87 = vector.load %arg2[%86, %c0_37] : memref<64x32xf32, #tpu.memory_space<vmem>>, vector<1x32xf32>
    %88 = arith.addf %80, %87 : vector<1x32xf32>
    %c2_i32_38 = arith.constant 2 : i32
    %89 = arith.index_cast %71 : i32 to index
    %90 = arith.index_cast %c2_i32_38 : i32 to index
    %91 = memref.load %arg1[%89, %90] : memref<16x8xi32, #tpu.memory_space<smem>>
    %c0_i32_39 = arith.constant 0 : i32
    %c63_i32_40 = arith.constant 63 : i32
    %92 = arith.maxsi %c0_i32_39, %91 : i32
    %93 = arith.minsi %c63_i32_40, %92 : i32
    %94 = arith.index_cast %93 : i32 to index
    %c0_41 = arith.constant 0 : index
    %95 = vector.load %arg2[%94, %c0_41] : memref<64x32xf32, #tpu.memory_space<vmem>>, vector<1x32xf32>
    %96 = arith.addf %88, %95 : vector<1x32xf32>
    %c3_i32_42 = arith.constant 3 : i32
    %97 = arith.index_cast %71 : i32 to index
    %98 = arith.index_cast %c3_i32_42 : i32 to index
    %99 = memref.load %arg1[%97, %98] : memref<16x8xi32, #tpu.memory_space<smem>>
    %c0_i32_43 = arith.constant 0 : i32
    %c63_i32_44 = arith.constant 63 : i32
    %100 = arith.maxsi %c0_i32_43, %99 : i32
    %101 = arith.minsi %c63_i32_44, %100 : i32
    %102 = arith.index_cast %101 : i32 to index
    %c0_45 = arith.constant 0 : index
    %103 = vector.load %arg2[%102, %c0_45] : memref<64x32xf32, #tpu.memory_space<vmem>>, vector<1x32xf32>
    %104 = arith.addf %96, %103 : vector<1x32xf32>
    %c4_i32_46 = arith.constant 4 : i32
    %105 = arith.index_cast %71 : i32 to index
    %106 = arith.index_cast %c4_i32_46 : i32 to index
    %107 = memref.load %arg1[%105, %106] : memref<16x8xi32, #tpu.memory_space<smem>>
    %c0_i32_47 = arith.constant 0 : i32
    %c63_i32_48 = arith.constant 63 : i32
    %108 = arith.maxsi %c0_i32_47, %107 : i32
    %109 = arith.minsi %c63_i32_48, %108 : i32
    %110 = arith.index_cast %109 : i32 to index
    %c0_49 = arith.constant 0 : index
    %111 = vector.load %arg2[%110, %c0_49] : memref<64x32xf32, #tpu.memory_space<vmem>>, vector<1x32xf32>
    %112 = arith.addf %104, %111 : vector<1x32xf32>
    %c5_i32_50 = arith.constant 5 : i32
    %113 = arith.index_cast %71 : i32 to index
    %114 = arith.index_cast %c5_i32_50 : i32 to index
    %115 = memref.load %arg1[%113, %114] : memref<16x8xi32, #tpu.memory_space<smem>>
    %c0_i32_51 = arith.constant 0 : i32
    %c63_i32_52 = arith.constant 63 : i32
    %116 = arith.maxsi %c0_i32_51, %115 : i32
    %117 = arith.minsi %c63_i32_52, %116 : i32
    %118 = arith.index_cast %117 : i32 to index
    %c0_53 = arith.constant 0 : index
    %119 = vector.load %arg2[%118, %c0_53] : memref<64x32xf32, #tpu.memory_space<vmem>>, vector<1x32xf32>
    %120 = arith.addf %112, %119 : vector<1x32xf32>
    %c6_i32_54 = arith.constant 6 : i32
    %121 = arith.index_cast %71 : i32 to index
    %122 = arith.index_cast %c6_i32_54 : i32 to index
    %123 = memref.load %arg1[%121, %122] : memref<16x8xi32, #tpu.memory_space<smem>>
    %c0_i32_55 = arith.constant 0 : i32
    %c63_i32_56 = arith.constant 63 : i32
    %124 = arith.maxsi %c0_i32_55, %123 : i32
    %125 = arith.minsi %c63_i32_56, %124 : i32
    %126 = arith.index_cast %125 : i32 to index
    %c0_57 = arith.constant 0 : index
    %127 = vector.load %arg2[%126, %c0_57] : memref<64x32xf32, #tpu.memory_space<vmem>>, vector<1x32xf32>
    %128 = arith.addf %120, %127 : vector<1x32xf32>
    %c7_i32_58 = arith.constant 7 : i32
    %129 = arith.index_cast %71 : i32 to index
    %130 = arith.index_cast %c7_i32_58 : i32 to index
    %131 = memref.load %arg1[%129, %130] : memref<16x8xi32, #tpu.memory_space<smem>>
    %c0_i32_59 = arith.constant 0 : i32
    %c63_i32_60 = arith.constant 63 : i32
    %132 = arith.maxsi %c0_i32_59, %131 : i32
    %133 = arith.minsi %c63_i32_60, %132 : i32
    %134 = arith.index_cast %133 : i32 to index
    %c0_61 = arith.constant 0 : index
    %135 = vector.load %arg2[%134, %c0_61] : memref<64x32xf32, #tpu.memory_space<vmem>>, vector<1x32xf32>
    %136 = arith.addf %128, %135 : vector<1x32xf32>
    %c8_i32_62 = arith.constant 8 : i32
    %cst_63 = arith.constant 1.250000e-01 : f32
    %137 = vector.broadcast %cst_63 : f32 to vector<1x32xf32>
    %138 = arith.mulf %136, %137 : vector<1x32xf32>
    %c1 = arith.constant 1 : index
    %c0_64 = arith.constant 0 : index
    %139 = vector.load %arg8[%c1, %c0_64] : memref<8x32xf32, #tpu.memory_space<vmem>>, vector<1x32xf32>
    tpu.vector_store %arg8[%c1, %c0_64], %138 {strides = array<i32>} : memref<8x32xf32, #tpu.memory_space<vmem>>, vector<1x32xf32>,
    %c8_i32_65 = arith.constant 8 : i32
    %140 = arith.muli %arg0, %c8_i32_65 : i32
    %c2_i32_66 = arith.constant 2 : i32
    %141 = arith.addi %140, %c2_i32_66 : i32
    %cst_67 = arith.constant 0.000000e+00 : f32
    %142 = vector.broadcast %cst_67 : f32 to vector<1x32xf32>
    %c0_i32_68 = arith.constant 0 : i32
    %143 = arith.index_cast %141 : i32 to index
    %144 = arith.index_cast %c0_i32_68 : i32 to index
    %145 = memref.load %arg1[%143, %144] : memref<16x8xi32, #tpu.memory_space<smem>>
    %c0_i32_69 = arith.constant 0 : i32
    %c63_i32_70 = arith.constant 63 : i32
    %146 = arith.maxsi %c0_i32_69, %145 : i32
    %147 = arith.minsi %c63_i32_70, %146 : i32
    %148 = arith.index_cast %147 : i32 to index
    %c0_71 = arith.constant 0 : index
    %149 = vector.load %arg2[%148, %c0_71] : memref<64x32xf32, #tpu.memory_space<vmem>>, vector<1x32xf32>
    %150 = arith.addf %142, %149 : vector<1x32xf32>
    %c1_i32_72 = arith.constant 1 : i32
    %151 = arith.index_cast %141 : i32 to index
    %152 = arith.index_cast %c1_i32_72 : i32 to index
    %153 = memref.load %arg1[%151, %152] : memref<16x8xi32, #tpu.memory_space<smem>>
    %c0_i32_73 = arith.constant 0 : i32
    %c63_i32_74 = arith.constant 63 : i32
    %154 = arith.maxsi %c0_i32_73, %153 : i32
    %155 = arith.minsi %c63_i32_74, %154 : i32
    %156 = arith.index_cast %155 : i32 to index
    %c0_75 = arith.constant 0 : index
    %157 = vector.load %arg2[%156, %c0_75] : memref<64x32xf32, #tpu.memory_space<vmem>>, vector<1x32xf32>
    %158 = arith.addf %150, %157 : vector<1x32xf32>
    %c2_i32_76 = arith.constant 2 : i32
    %159 = arith.index_cast %141 : i32 to index
    %160 = arith.index_cast %c2_i32_76 : i32 to index
    %161 = memref.load %arg1[%159, %160] : memref<16x8xi32, #tpu.memory_space<smem>>
    %c0_i32_77 = arith.constant 0 : i32
    %c63_i32_78 = arith.constant 63 : i32
    %162 = arith.maxsi %c0_i32_77, %161 : i32
    %163 = arith.minsi %c63_i32_78, %162 : i32
    %164 = arith.index_cast %163 : i32 to index
    %c0_79 = arith.constant 0 : index
    %165 = vector.load %arg2[%164, %c0_79] : memref<64x32xf32, #tpu.memory_space<vmem>>, vector<1x32xf32>
    %166 = arith.addf %158, %165 : vector<1x32xf32>
    %c3_i32_80 = arith.constant 3 : i32
    %167 = arith.index_cast %141 : i32 to index
    %168 = arith.index_cast %c3_i32_80 : i32 to index
    %169 = memref.load %arg1[%167, %168] : memref<16x8xi32, #tpu.memory_space<smem>>
    %c0_i32_81 = arith.constant 0 : i32
    %c63_i32_82 = arith.constant 63 : i32
    %170 = arith.maxsi %c0_i32_81, %169 : i32
    %171 = arith.minsi %c63_i32_82, %170 : i32
    %172 = arith.index_cast %171 : i32 to index
    %c0_83 = arith.constant 0 : index
    %173 = vector.load %arg2[%172, %c0_83] : memref<64x32xf32, #tpu.memory_space<vmem>>, vector<1x32xf32>
    %174 = arith.addf %166, %173 : vector<1x32xf32>
    %c4_i32_84 = arith.constant 4 : i32
    %175 = arith.index_cast %141 : i32 to index
    %176 = arith.index_cast %c4_i32_84 : i32 to index
    %177 = memref.load %arg1[%175, %176] : memref<16x8xi32, #tpu.memory_space<smem>>
    %c0_i32_85 = arith.constant 0 : i32
    %c63_i32_86 = arith.constant 63 : i32
    %178 = arith.maxsi %c0_i32_85, %177 : i32
    %179 = arith.minsi %c63_i32_86, %178 : i32
    %180 = arith.index_cast %179 : i32 to index
    %c0_87 = arith.constant 0 : index
    %181 = vector.load %arg2[%180, %c0_87] : memref<64x32xf32, #tpu.memory_space<vmem>>, vector<1x32xf32>
    %182 = arith.addf %174, %181 : vector<1x32xf32>
    %c5_i32_88 = arith.constant 5 : i32
    %183 = arith.index_cast %141 : i32 to index
    %184 = arith.index_cast %c5_i32_88 : i32 to index
    %185 = memref.load %arg1[%183, %184] : memref<16x8xi32, #tpu.memory_space<smem>>
    %c0_i32_89 = arith.constant 0 : i32
    %c63_i32_90 = arith.constant 63 : i32
    %186 = arith.maxsi %c0_i32_89, %185 : i32
    %187 = arith.minsi %c63_i32_90, %186 : i32
    %188 = arith.index_cast %187 : i32 to index
    %c0_91 = arith.constant 0 : index
    %189 = vector.load %arg2[%188, %c0_91] : memref<64x32xf32, #tpu.memory_space<vmem>>, vector<1x32xf32>
    %190 = arith.addf %182, %189 : vector<1x32xf32>
    %c6_i32_92 = arith.constant 6 : i32
    %191 = arith.index_cast %141 : i32 to index
    %192 = arith.index_cast %c6_i32_92 : i32 to index
    %193 = memref.load %arg1[%191, %192] : memref<16x8xi32, #tpu.memory_space<smem>>
    %c0_i32_93 = arith.constant 0 : i32
    %c63_i32_94 = arith.constant 63 : i32
    %194 = arith.maxsi %c0_i32_93, %193 : i32
    %195 = arith.minsi %c63_i32_94, %194 : i32
    %196 = arith.index_cast %195 : i32 to index
    %c0_95 = arith.constant 0 : index
    %197 = vector.load %arg2[%196, %c0_95] : memref<64x32xf32, #tpu.memory_space<vmem>>, vector<1x32xf32>
    %198 = arith.addf %190, %197 : vector<1x32xf32>
    %c7_i32_96 = arith.constant 7 : i32
    %199 = arith.index_cast %141 : i32 to index
    %200 = arith.index_cast %c7_i32_96 : i32 to index
    %201 = memref.load %arg1[%199, %200] : memref<16x8xi32, #tpu.memory_space<smem>>
    %c0_i32_97 = arith.constant 0 : i32
    %c63_i32_98 = arith.constant 63 : i32
    %202 = arith.maxsi %c0_i32_97, %201 : i32
    %203 = arith.minsi %c63_i32_98, %202 : i32
    %204 = arith.index_cast %203 : i32 to index
    %c0_99 = arith.constant 0 : index
    %205 = vector.load %arg2[%204, %c0_99] : memref<64x32xf32, #tpu.memory_space<vmem>>, vector<1x32xf32>
    %206 = arith.addf %198, %205 : vector<1x32xf32>
    %c8_i32_100 = arith.constant 8 : i32
    %cst_101 = arith.constant 1.250000e-01 : f32
    %207 = vector.broadcast %cst_101 : f32 to vector<1x32xf32>
    %208 = arith.mulf %206, %207 : vector<1x32xf32>
    %c2 = arith.constant 2 : index
    %c0_102 = arith.constant 0 : index
    %209 = vector.load %arg8[%c2, %c0_102] : memref<8x32xf32, #tpu.memory_space<vmem>>, vector<1x32xf32>
    tpu.vector_store %arg8[%c2, %c0_102], %208 {strides = array<i32>} : memref<8x32xf32, #tpu.memory_space<vmem>>, vector<1x32xf32>,
    %c8_i32_103 = arith.constant 8 : i32
    %210 = arith.muli %arg0, %c8_i32_103 : i32
    %c3_i32_104 = arith.constant 3 : i32
    %211 = arith.addi %210, %c3_i32_104 : i32
    %cst_105 = arith.constant 0.000000e+00 : f32
    %212 = vector.broadcast %cst_105 : f32 to vector<1x32xf32>
    %c0_i32_106 = arith.constant 0 : i32
    %213 = arith.index_cast %211 : i32 to index
    %214 = arith.index_cast %c0_i32_106 : i32 to index
    %215 = memref.load %arg1[%213, %214] : memref<16x8xi32, #tpu.memory_space<smem>>
    %c0_i32_107 = arith.constant 0 : i32
    %c63_i32_108 = arith.constant 63 : i32
    %216 = arith.maxsi %c0_i32_107, %215 : i32
    %217 = arith.minsi %c63_i32_108, %216 : i32
    %218 = arith.index_cast %217 : i32 to index
    %c0_109 = arith.constant 0 : index
    %219 = vector.load %arg2[%218, %c0_109] : memref<64x32xf32, #tpu.memory_space<vmem>>, vector<1x32xf32>
    %220 = arith.addf %212, %219 : vector<1x32xf32>
    %c1_i32_110 = arith.constant 1 : i32
    %221 = arith.index_cast %211 : i32 to index
    %222 = arith.index_cast %c1_i32_110 : i32 to index
    %223 = memref.load %arg1[%221, %222] : memref<16x8xi32, #tpu.memory_space<smem>>
    %c0_i32_111 = arith.constant 0 : i32
    %c63_i32_112 = arith.constant 63 : i32
    %224 = arith.maxsi %c0_i32_111, %223 : i32
    %225 = arith.minsi %c63_i32_112, %224 : i32
    %226 = arith.index_cast %225 : i32 to index
    %c0_113 = arith.constant 0 : index
    %227 = vector.load %arg2[%226, %c0_113] : memref<64x32xf32, #tpu.memory_space<vmem>>, vector<1x32xf32>
    %228 = arith.addf %220, %227 : vector<1x32xf32>
    %c2_i32_114 = arith.constant 2 : i32
    %229 = arith.index_cast %211 : i32 to index
    %230 = arith.index_cast %c2_i32_114 : i32 to index
    %231 = memref.load %arg1[%229, %230] : memref<16x8xi32, #tpu.memory_space<smem>>
    %c0_i32_115 = arith.constant 0 : i32
    %c63_i32_116 = arith.constant 63 : i32
    %232 = arith.maxsi %c0_i32_115, %231 : i32
    %233 = arith.minsi %c63_i32_116, %232 : i32
    %234 = arith.index_cast %233 : i32 to index
    %c0_117 = arith.constant 0 : index
    %235 = vector.load %arg2[%234, %c0_117] : memref<64x32xf32, #tpu.memory_space<vmem>>, vector<1x32xf32>
    %236 = arith.addf %228, %235 : vector<1x32xf32>
    %c3_i32_118 = arith.constant 3 : i32
    %237 = arith.index_cast %211 : i32 to index
    %238 = arith.index_cast %c3_i32_118 : i32 to index
    %239 = memref.load %arg1[%237, %238] : memref<16x8xi32, #tpu.memory_space<smem>>
    %c0_i32_119 = arith.constant 0 : i32
    %c63_i32_120 = arith.constant 63 : i32
    %240 = arith.maxsi %c0_i32_119, %239 : i32
    %241 = arith.minsi %c63_i32_120, %240 : i32
    %242 = arith.index_cast %241 : i32 to index
    %c0_121 = arith.constant 0 : index
    %243 = vector.load %arg2[%242, %c0_121] : memref<64x32xf32, #tpu.memory_space<vmem>>, vector<1x32xf32>
    %244 = arith.addf %236, %243 : vector<1x32xf32>
    %c4_i32_122 = arith.constant 4 : i32
    %245 = arith.index_cast %211 : i32 to index
    %246 = arith.index_cast %c4_i32_122 : i32 to index
    %247 = memref.load %arg1[%245, %246] : memref<16x8xi32, #tpu.memory_space<smem>>
    %c0_i32_123 = arith.constant 0 : i32
    %c63_i32_124 = arith.constant 63 : i32
    %248 = arith.maxsi %c0_i32_123, %247 : i32
    %249 = arith.minsi %c63_i32_124, %248 : i32
    %250 = arith.index_cast %249 : i32 to index
    %c0_125 = arith.constant 0 : index
    %251 = vector.load %arg2[%250, %c0_125] : memref<64x32xf32, #tpu.memory_space<vmem>>, vector<1x32xf32>
    %252 = arith.addf %244, %251 : vector<1x32xf32>
    %c5_i32_126 = arith.constant 5 : i32
    %253 = arith.index_cast %211 : i32 to index
    %254 = arith.index_cast %c5_i32_126 : i32 to index
    %255 = memref.load %arg1[%253, %254] : memref<16x8xi32, #tpu.memory_space<smem>>
    %c0_i32_127 = arith.constant 0 : i32
    %c63_i32_128 = arith.constant 63 : i32
    %256 = arith.maxsi %c0_i32_127, %255 : i32
    %257 = arith.minsi %c63_i32_128, %256 : i32
    %258 = arith.index_cast %257 : i32 to index
    %c0_129 = arith.constant 0 : index
    %259 = vector.load %arg2[%258, %c0_129] : memref<64x32xf32, #tpu.memory_space<vmem>>, vector<1x32xf32>
    %260 = arith.addf %252, %259 : vector<1x32xf32>
    %c6_i32_130 = arith.constant 6 : i32
    %261 = arith.index_cast %211 : i32 to index
    %262 = arith.index_cast %c6_i32_130 : i32 to index
    %263 = memref.load %arg1[%261, %262] : memref<16x8xi32, #tpu.memory_space<smem>>
    %c0_i32_131 = arith.constant 0 : i32
    %c63_i32_132 = arith.constant 63 : i32
    %264 = arith.maxsi %c0_i32_131, %263 : i32
    %265 = arith.minsi %c63_i32_132, %264 : i32
    %266 = arith.index_cast %265 : i32 to index
    %c0_133 = arith.constant 0 : index
    %267 = vector.load %arg2[%266, %c0_133] : memref<64x32xf32, #tpu.memory_space<vmem>>, vector<1x32xf32>
    %268 = arith.addf %260, %267 : vector<1x32xf32>
    %c7_i32_134 = arith.constant 7 : i32
    %269 = arith.index_cast %211 : i32 to index
    %270 = arith.index_cast %c7_i32_134 : i32 to index
    %271 = memref.load %arg1[%269, %270] : memref<16x8xi32, #tpu.memory_space<smem>>
    %c0_i32_135 = arith.constant 0 : i32
    %c63_i32_136 = arith.constant 63 : i32
    %272 = arith.maxsi %c0_i32_135, %271 : i32
    %273 = arith.minsi %c63_i32_136, %272 : i32
    %274 = arith.index_cast %273 : i32 to index
    %c0_137 = arith.constant 0 : index
    %275 = vector.load %arg2[%274, %c0_137] : memref<64x32xf32, #tpu.memory_space<vmem>>, vector<1x32xf32>
    %276 = arith.addf %268, %275 : vector<1x32xf32>
    %c8_i32_138 = arith.constant 8 : i32
    %cst_139 = arith.constant 1.250000e-01 : f32
    %277 = vector.broadcast %cst_139 : f32 to vector<1x32xf32>
    %278 = arith.mulf %276, %277 : vector<1x32xf32>
    %c3 = arith.constant 3 : index
    %c0_140 = arith.constant 0 : index
    %279 = vector.load %arg8[%c3, %c0_140] : memref<8x32xf32, #tpu.memory_space<vmem>>, vector<1x32xf32>
    tpu.vector_store %arg8[%c3, %c0_140], %278 {strides = array<i32>} : memref<8x32xf32, #tpu.memory_space<vmem>>, vector<1x32xf32>,
    %c8_i32_141 = arith.constant 8 : i32
    %280 = arith.muli %arg0, %c8_i32_141 : i32
    %c4_i32_142 = arith.constant 4 : i32
    %281 = arith.addi %280, %c4_i32_142 : i32
    %cst_143 = arith.constant 0.000000e+00 : f32
    %282 = vector.broadcast %cst_143 : f32 to vector<1x32xf32>
    %c0_i32_144 = arith.constant 0 : i32
    %283 = arith.index_cast %281 : i32 to index
    %284 = arith.index_cast %c0_i32_144 : i32 to index
    %285 = memref.load %arg1[%283, %284] : memref<16x8xi32, #tpu.memory_space<smem>>
    %c0_i32_145 = arith.constant 0 : i32
    %c63_i32_146 = arith.constant 63 : i32
    %286 = arith.maxsi %c0_i32_145, %285 : i32
    %287 = arith.minsi %c63_i32_146, %286 : i32
    %288 = arith.index_cast %287 : i32 to index
    %c0_147 = arith.constant 0 : index
    %289 = vector.load %arg2[%288, %c0_147] : memref<64x32xf32, #tpu.memory_space<vmem>>, vector<1x32xf32>
    %290 = arith.addf %282, %289 : vector<1x32xf32>
    %c1_i32_148 = arith.constant 1 : i32
    %291 = arith.index_cast %281 : i32 to index
    %292 = arith.index_cast %c1_i32_148 : i32 to index
    %293 = memref.load %arg1[%291, %292] : memref<16x8xi32, #tpu.memory_space<smem>>
    %c0_i32_149 = arith.constant 0 : i32
    %c63_i32_150 = arith.constant 63 : i32
    %294 = arith.maxsi %c0_i32_149, %293 : i32
    %295 = arith.minsi %c63_i32_150, %294 : i32
    %296 = arith.index_cast %295 : i32 to index
    %c0_151 = arith.constant 0 : index
    %297 = vector.load %arg2[%296, %c0_151] : memref<64x32xf32, #tpu.memory_space<vmem>>, vector<1x32xf32>
    %298 = arith.addf %290, %297 : vector<1x32xf32>
    %c2_i32_152 = arith.constant 2 : i32
    %299 = arith.index_cast %281 : i32 to index
    %300 = arith.index_cast %c2_i32_152 : i32 to index
    %301 = memref.load %arg1[%299, %300] : memref<16x8xi32, #tpu.memory_space<smem>>
    %c0_i32_153 = arith.constant 0 : i32
    %c63_i32_154 = arith.constant 63 : i32
    %302 = arith.maxsi %c0_i32_153, %301 : i32
    %303 = arith.minsi %c63_i32_154, %302 : i32
    %304 = arith.index_cast %303 : i32 to index
    %c0_155 = arith.constant 0 : index
    %305 = vector.load %arg2[%304, %c0_155] : memref<64x32xf32, #tpu.memory_space<vmem>>, vector<1x32xf32>
    %306 = arith.addf %298, %305 : vector<1x32xf32>
    %c3_i32_156 = arith.constant 3 : i32
    %307 = arith.index_cast %281 : i32 to index
    %308 = arith.index_cast %c3_i32_156 : i32 to index
    %309 = memref.load %arg1[%307, %308] : memref<16x8xi32, #tpu.memory_space<smem>>
    %c0_i32_157 = arith.constant 0 : i32
    %c63_i32_158 = arith.constant 63 : i32
    %310 = arith.maxsi %c0_i32_157, %309 : i32
    %311 = arith.minsi %c63_i32_158, %310 : i32
    %312 = arith.index_cast %311 : i32 to index
    %c0_159 = arith.constant 0 : index
    %313 = vector.load %arg2[%312, %c0_159] : memref<64x32xf32, #tpu.memory_space<vmem>>, vector<1x32xf32>
    %314 = arith.addf %306, %313 : vector<1x32xf32>
    %c4_i32_160 = arith.constant 4 : i32
    %315 = arith.index_cast %281 : i32 to index
    %316 = arith.index_cast %c4_i32_160 : i32 to index
    %317 = memref.load %arg1[%315, %316] : memref<16x8xi32, #tpu.memory_space<smem>>
    %c0_i32_161 = arith.constant 0 : i32
    %c63_i32_162 = arith.constant 63 : i32
    %318 = arith.maxsi %c0_i32_161, %317 : i32
    %319 = arith.minsi %c63_i32_162, %318 : i32
    %320 = arith.index_cast %319 : i32 to index
    %c0_163 = arith.constant 0 : index
    %321 = vector.load %arg2[%320, %c0_163] : memref<64x32xf32, #tpu.memory_space<vmem>>, vector<1x32xf32>
    %322 = arith.addf %314, %321 : vector<1x32xf32>
    %c5_i32_164 = arith.constant 5 : i32
    %323 = arith.index_cast %281 : i32 to index
    %324 = arith.index_cast %c5_i32_164 : i32 to index
    %325 = memref.load %arg1[%323, %324] : memref<16x8xi32, #tpu.memory_space<smem>>
    %c0_i32_165 = arith.constant 0 : i32
    %c63_i32_166 = arith.constant 63 : i32
    %326 = arith.maxsi %c0_i32_165, %325 : i32
    %327 = arith.minsi %c63_i32_166, %326 : i32
    %328 = arith.index_cast %327 : i32 to index
    %c0_167 = arith.constant 0 : index
    %329 = vector.load %arg2[%328, %c0_167] : memref<64x32xf32, #tpu.memory_space<vmem>>, vector<1x32xf32>
    %330 = arith.addf %322, %329 : vector<1x32xf32>
    %c6_i32_168 = arith.constant 6 : i32
    %331 = arith.index_cast %281 : i32 to index
    %332 = arith.index_cast %c6_i32_168 : i32 to index
    %333 = memref.load %arg1[%331, %332] : memref<16x8xi32, #tpu.memory_space<smem>>
    %c0_i32_169 = arith.constant 0 : i32
    %c63_i32_170 = arith.constant 63 : i32
    %334 = arith.maxsi %c0_i32_169, %333 : i32
    %335 = arith.minsi %c63_i32_170, %334 : i32
    %336 = arith.index_cast %335 : i32 to index
    %c0_171 = arith.constant 0 : index
    %337 = vector.load %arg2[%336, %c0_171] : memref<64x32xf32, #tpu.memory_space<vmem>>, vector<1x32xf32>
    %338 = arith.addf %330, %337 : vector<1x32xf32>
    %c7_i32_172 = arith.constant 7 : i32
    %339 = arith.index_cast %281 : i32 to index
    %340 = arith.index_cast %c7_i32_172 : i32 to index
    %341 = memref.load %arg1[%339, %340] : memref<16x8xi32, #tpu.memory_space<smem>>
    %c0_i32_173 = arith.constant 0 : i32
    %c63_i32_174 = arith.constant 63 : i32
    %342 = arith.maxsi %c0_i32_173, %341 : i32
    %343 = arith.minsi %c63_i32_174, %342 : i32
    %344 = arith.index_cast %343 : i32 to index
    %c0_175 = arith.constant 0 : index
    %345 = vector.load %arg2[%344, %c0_175] : memref<64x32xf32, #tpu.memory_space<vmem>>, vector<1x32xf32>
    %346 = arith.addf %338, %345 : vector<1x32xf32>
    %c8_i32_176 = arith.constant 8 : i32
    %cst_177 = arith.constant 1.250000e-01 : f32
    %347 = vector.broadcast %cst_177 : f32 to vector<1x32xf32>
    %348 = arith.mulf %346, %347 : vector<1x32xf32>
    %c4 = arith.constant 4 : index
    %c0_178 = arith.constant 0 : index
    %349 = vector.load %arg8[%c4, %c0_178] : memref<8x32xf32, #tpu.memory_space<vmem>>, vector<1x32xf32>
    tpu.vector_store %arg8[%c4, %c0_178], %348 {strides = array<i32>} : memref<8x32xf32, #tpu.memory_space<vmem>>, vector<1x32xf32>,
    %c8_i32_179 = arith.constant 8 : i32
    %350 = arith.muli %arg0, %c8_i32_179 : i32
    %c5_i32_180 = arith.constant 5 : i32
    %351 = arith.addi %350, %c5_i32_180 : i32
    %cst_181 = arith.constant 0.000000e+00 : f32
    %352 = vector.broadcast %cst_181 : f32 to vector<1x32xf32>
    %c0_i32_182 = arith.constant 0 : i32
    %353 = arith.index_cast %351 : i32 to index
    %354 = arith.index_cast %c0_i32_182 : i32 to index
    %355 = memref.load %arg1[%353, %354] : memref<16x8xi32, #tpu.memory_space<smem>>
    %c0_i32_183 = arith.constant 0 : i32
    %c63_i32_184 = arith.constant 63 : i32
    %356 = arith.maxsi %c0_i32_183, %355 : i32
    %357 = arith.minsi %c63_i32_184, %356 : i32
    %358 = arith.index_cast %357 : i32 to index
    %c0_185 = arith.constant 0 : index
    %359 = vector.load %arg2[%358, %c0_185] : memref<64x32xf32, #tpu.memory_space<vmem>>, vector<1x32xf32>
    %360 = arith.addf %352, %359 : vector<1x32xf32>
    %c1_i32_186 = arith.constant 1 : i32
    %361 = arith.index_cast %351 : i32 to index
    %362 = arith.index_cast %c1_i32_186 : i32 to index
    %363 = memref.load %arg1[%361, %362] : memref<16x8xi32, #tpu.memory_space<smem>>
    %c0_i32_187 = arith.constant 0 : i32
    %c63_i32_188 = arith.constant 63 : i32
    %364 = arith.maxsi %c0_i32_187, %363 : i32
    %365 = arith.minsi %c63_i32_188, %364 : i32
    %366 = arith.index_cast %365 : i32 to index
    %c0_189 = arith.constant 0 : index
    %367 = vector.load %arg2[%366, %c0_189] : memref<64x32xf32, #tpu.memory_space<vmem>>, vector<1x32xf32>
    %368 = arith.addf %360, %367 : vector<1x32xf32>
    %c2_i32_190 = arith.constant 2 : i32
    %369 = arith.index_cast %351 : i32 to index
    %370 = arith.index_cast %c2_i32_190 : i32 to index
    %371 = memref.load %arg1[%369, %370] : memref<16x8xi32, #tpu.memory_space<smem>>
    %c0_i32_191 = arith.constant 0 : i32
    %c63_i32_192 = arith.constant 63 : i32
    %372 = arith.maxsi %c0_i32_191, %371 : i32
    %373 = arith.minsi %c63_i32_192, %372 : i32
    %374 = arith.index_cast %373 : i32 to index
    %c0_193 = arith.constant 0 : index
    %375 = vector.load %arg2[%374, %c0_193] : memref<64x32xf32, #tpu.memory_space<vmem>>, vector<1x32xf32>
    %376 = arith.addf %368, %375 : vector<1x32xf32>
    %c3_i32_194 = arith.constant 3 : i32
    %377 = arith.index_cast %351 : i32 to index
    %378 = arith.index_cast %c3_i32_194 : i32 to index
    %379 = memref.load %arg1[%377, %378] : memref<16x8xi32, #tpu.memory_space<smem>>
    %c0_i32_195 = arith.constant 0 : i32
    %c63_i32_196 = arith.constant 63 : i32
    %380 = arith.maxsi %c0_i32_195, %379 : i32
    %381 = arith.minsi %c63_i32_196, %380 : i32
    %382 = arith.index_cast %381 : i32 to index
    %c0_197 = arith.constant 0 : index
    %383 = vector.load %arg2[%382, %c0_197] : memref<64x32xf32, #tpu.memory_space<vmem>>, vector<1x32xf32>
    %384 = arith.addf %376, %383 : vector<1x32xf32>
    %c4_i32_198 = arith.constant 4 : i32
    %385 = arith.index_cast %351 : i32 to index
    %386 = arith.index_cast %c4_i32_198 : i32 to index
    %387 = memref.load %arg1[%385, %386] : memref<16x8xi32, #tpu.memory_space<smem>>
    %c0_i32_199 = arith.constant 0 : i32
    %c63_i32_200 = arith.constant 63 : i32
    %388 = arith.maxsi %c0_i32_199, %387 : i32
    %389 = arith.minsi %c63_i32_200, %388 : i32
    %390 = arith.index_cast %389 : i32 to index
    %c0_201 = arith.constant 0 : index
    %391 = vector.load %arg2[%390, %c0_201] : memref<64x32xf32, #tpu.memory_space<vmem>>, vector<1x32xf32>
    %392 = arith.addf %384, %391 : vector<1x32xf32>
    %c5_i32_202 = arith.constant 5 : i32
    %393 = arith.index_cast %351 : i32 to index
    %394 = arith.index_cast %c5_i32_202 : i32 to index
    %395 = memref.load %arg1[%393, %394] : memref<16x8xi32, #tpu.memory_space<smem>>
    %c0_i32_203 = arith.constant 0 : i32
    %c63_i32_204 = arith.constant 63 : i32
    %396 = arith.maxsi %c0_i32_203, %395 : i32
    %397 = arith.minsi %c63_i32_204, %396 : i32
    %398 = arith.index_cast %397 : i32 to index
    %c0_205 = arith.constant 0 : index
    %399 = vector.load %arg2[%398, %c0_205] : memref<64x32xf32, #tpu.memory_space<vmem>>, vector<1x32xf32>
    %400 = arith.addf %392, %399 : vector<1x32xf32>
    %c6_i32_206 = arith.constant 6 : i32
    %401 = arith.index_cast %351 : i32 to index
    %402 = arith.index_cast %c6_i32_206 : i32 to index
    %403 = memref.load %arg1[%401, %402] : memref<16x8xi32, #tpu.memory_space<smem>>
    %c0_i32_207 = arith.constant 0 : i32
    %c63_i32_208 = arith.constant 63 : i32
    %404 = arith.maxsi %c0_i32_207, %403 : i32
    %405 = arith.minsi %c63_i32_208, %404 : i32
    %406 = arith.index_cast %405 : i32 to index
    %c0_209 = arith.constant 0 : index
    %407 = vector.load %arg2[%406, %c0_209] : memref<64x32xf32, #tpu.memory_space<vmem>>, vector<1x32xf32>
    %408 = arith.addf %400, %407 : vector<1x32xf32>
    %c7_i32_210 = arith.constant 7 : i32
    %409 = arith.index_cast %351 : i32 to index
    %410 = arith.index_cast %c7_i32_210 : i32 to index
    %411 = memref.load %arg1[%409, %410] : memref<16x8xi32, #tpu.memory_space<smem>>
    %c0_i32_211 = arith.constant 0 : i32
    %c63_i32_212 = arith.constant 63 : i32
    %412 = arith.maxsi %c0_i32_211, %411 : i32
    %413 = arith.minsi %c63_i32_212, %412 : i32
    %414 = arith.index_cast %413 : i32 to index
    %c0_213 = arith.constant 0 : index
    %415 = vector.load %arg2[%414, %c0_213] : memref<64x32xf32, #tpu.memory_space<vmem>>, vector<1x32xf32>
    %416 = arith.addf %408, %415 : vector<1x32xf32>
    %c8_i32_214 = arith.constant 8 : i32
    %cst_215 = arith.constant 1.250000e-01 : f32
    %417 = vector.broadcast %cst_215 : f32 to vector<1x32xf32>
    %418 = arith.mulf %416, %417 : vector<1x32xf32>
    %c5 = arith.constant 5 : index
    %c0_216 = arith.constant 0 : index
    %419 = vector.load %arg8[%c5, %c0_216] : memref<8x32xf32, #tpu.memory_space<vmem>>, vector<1x32xf32>
    tpu.vector_store %arg8[%c5, %c0_216], %418 {strides = array<i32>} : memref<8x32xf32, #tpu.memory_space<vmem>>, vector<1x32xf32>,
    %c8_i32_217 = arith.constant 8 : i32
    %420 = arith.muli %arg0, %c8_i32_217 : i32
    %c6_i32_218 = arith.constant 6 : i32
    %421 = arith.addi %420, %c6_i32_218 : i32
    %cst_219 = arith.constant 0.000000e+00 : f32
    %422 = vector.broadcast %cst_219 : f32 to vector<1x32xf32>
    %c0_i32_220 = arith.constant 0 : i32
    %423 = arith.index_cast %421 : i32 to index
    %424 = arith.index_cast %c0_i32_220 : i32 to index
    %425 = memref.load %arg1[%423, %424] : memref<16x8xi32, #tpu.memory_space<smem>>
    %c0_i32_221 = arith.constant 0 : i32
    %c63_i32_222 = arith.constant 63 : i32
    %426 = arith.maxsi %c0_i32_221, %425 : i32
    %427 = arith.minsi %c63_i32_222, %426 : i32
    %428 = arith.index_cast %427 : i32 to index
    %c0_223 = arith.constant 0 : index
    %429 = vector.load %arg2[%428, %c0_223] : memref<64x32xf32, #tpu.memory_space<vmem>>, vector<1x32xf32>
    %430 = arith.addf %422, %429 : vector<1x32xf32>
    %c1_i32_224 = arith.constant 1 : i32
    %431 = arith.index_cast %421 : i32 to index
    %432 = arith.index_cast %c1_i32_224 : i32 to index
    %433 = memref.load %arg1[%431, %432] : memref<16x8xi32, #tpu.memory_space<smem>>
    %c0_i32_225 = arith.constant 0 : i32
    %c63_i32_226 = arith.constant 63 : i32
    %434 = arith.maxsi %c0_i32_225, %433 : i32
    %435 = arith.minsi %c63_i32_226, %434 : i32
    %436 = arith.index_cast %435 : i32 to index
    %c0_227 = arith.constant 0 : index
    %437 = vector.load %arg2[%436, %c0_227] : memref<64x32xf32, #tpu.memory_space<vmem>>, vector<1x32xf32>
    %438 = arith.addf %430, %437 : vector<1x32xf32>
    %c2_i32_228 = arith.constant 2 : i32
    %439 = arith.index_cast %421 : i32 to index
    %440 = arith.index_cast %c2_i32_228 : i32 to index
    %441 = memref.load %arg1[%439, %440] : memref<16x8xi32, #tpu.memory_space<smem>>
    %c0_i32_229 = arith.constant 0 : i32
    %c63_i32_230 = arith.constant 63 : i32
    %442 = arith.maxsi %c0_i32_229, %441 : i32
    %443 = arith.minsi %c63_i32_230, %442 : i32
    %444 = arith.index_cast %443 : i32 to index
    %c0_231 = arith.constant 0 : index
    %445 = vector.load %arg2[%444, %c0_231] : memref<64x32xf32, #tpu.memory_space<vmem>>, vector<1x32xf32>
    %446 = arith.addf %438, %445 : vector<1x32xf32>
    %c3_i32_232 = arith.constant 3 : i32
    %447 = arith.index_cast %421 : i32 to index
    %448 = arith.index_cast %c3_i32_232 : i32 to index
    %449 = memref.load %arg1[%447, %448] : memref<16x8xi32, #tpu.memory_space<smem>>
    %c0_i32_233 = arith.constant 0 : i32
    %c63_i32_234 = arith.constant 63 : i32
    %450 = arith.maxsi %c0_i32_233, %449 : i32
    %451 = arith.minsi %c63_i32_234, %450 : i32
    %452 = arith.index_cast %451 : i32 to index
    %c0_235 = arith.constant 0 : index
    %453 = vector.load %arg2[%452, %c0_235] : memref<64x32xf32, #tpu.memory_space<vmem>>, vector<1x32xf32>
    %454 = arith.addf %446, %453 : vector<1x32xf32>
    %c4_i32_236 = arith.constant 4 : i32
    %455 = arith.index_cast %421 : i32 to index
    %456 = arith.index_cast %c4_i32_236 : i32 to index
    %457 = memref.load %arg1[%455, %456] : memref<16x8xi32, #tpu.memory_space<smem>>
    %c0_i32_237 = arith.constant 0 : i32
    %c63_i32_238 = arith.constant 63 : i32
    %458 = arith.maxsi %c0_i32_237, %457 : i32
    %459 = arith.minsi %c63_i32_238, %458 : i32
    %460 = arith.index_cast %459 : i32 to index
    %c0_239 = arith.constant 0 : index
    %461 = vector.load %arg2[%460, %c0_239] : memref<64x32xf32, #tpu.memory_space<vmem>>, vector<1x32xf32>
    %462 = arith.addf %454, %461 : vector<1x32xf32>
    %c5_i32_240 = arith.constant 5 : i32
    %463 = arith.index_cast %421 : i32 to index
    %464 = arith.index_cast %c5_i32_240 : i32 to index
    %465 = memref.load %arg1[%463, %464] : memref<16x8xi32, #tpu.memory_space<smem>>
    %c0_i32_241 = arith.constant 0 : i32
    %c63_i32_242 = arith.constant 63 : i32
    %466 = arith.maxsi %c0_i32_241, %465 : i32
    %467 = arith.minsi %c63_i32_242, %466 : i32
    %468 = arith.index_cast %467 : i32 to index
    %c0_243 = arith.constant 0 : index
    %469 = vector.load %arg2[%468, %c0_243] : memref<64x32xf32, #tpu.memory_space<vmem>>, vector<1x32xf32>
    %470 = arith.addf %462, %469 : vector<1x32xf32>
    %c6_i32_244 = arith.constant 6 : i32
    %471 = arith.index_cast %421 : i32 to index
    %472 = arith.index_cast %c6_i32_244 : i32 to index
    %473 = memref.load %arg1[%471, %472] : memref<16x8xi32, #tpu.memory_space<smem>>
    %c0_i32_245 = arith.constant 0 : i32
    %c63_i32_246 = arith.constant 63 : i32
    %474 = arith.maxsi %c0_i32_245, %473 : i32
    %475 = arith.minsi %c63_i32_246, %474 : i32
    %476 = arith.index_cast %475 : i32 to index
    %c0_247 = arith.constant 0 : index
    %477 = vector.load %arg2[%476, %c0_247] : memref<64x32xf32, #tpu.memory_space<vmem>>, vector<1x32xf32>
    %478 = arith.addf %470, %477 : vector<1x32xf32>
    %c7_i32_248 = arith.constant 7 : i32
    %479 = arith.index_cast %421 : i32 to index
    %480 = arith.index_cast %c7_i32_248 : i32 to index
    %481 = memref.load %arg1[%479, %480] : memref<16x8xi32, #tpu.memory_space<smem>>
    %c0_i32_249 = arith.constant 0 : i32
    %c63_i32_250 = arith.constant 63 : i32
    %482 = arith.maxsi %c0_i32_249, %481 : i32
    %483 = arith.minsi %c63_i32_250, %482 : i32
    %484 = arith.index_cast %483 : i32 to index
    %c0_251 = arith.constant 0 : index
    %485 = vector.load %arg2[%484, %c0_251] : memref<64x32xf32, #tpu.memory_space<vmem>>, vector<1x32xf32>
    %486 = arith.addf %478, %485 : vector<1x32xf32>
    %c8_i32_252 = arith.constant 8 : i32
    %cst_253 = arith.constant 1.250000e-01 : f32
    %487 = vector.broadcast %cst_253 : f32 to vector<1x32xf32>
    %488 = arith.mulf %486, %487 : vector<1x32xf32>
    %c6 = arith.constant 6 : index
    %c0_254 = arith.constant 0 : index
    %489 = vector.load %arg8[%c6, %c0_254] : memref<8x32xf32, #tpu.memory_space<vmem>>, vector<1x32xf32>
    tpu.vector_store %arg8[%c6, %c0_254], %488 {strides = array<i32>} : memref<8x32xf32, #tpu.memory_space<vmem>>, vector<1x32xf32>,
    %c8_i32_255 = arith.constant 8 : i32
    %490 = arith.muli %arg0, %c8_i32_255 : i32
    %c7_i32_256 = arith.constant 7 : i32
    %491 = arith.addi %490, %c7_i32_256 : i32
    %cst_257 = arith.constant 0.000000e+00 : f32
    %492 = vector.broadcast %cst_257 : f32 to vector<1x32xf32>
    %c0_i32_258 = arith.constant 0 : i32
    %493 = arith.index_cast %491 : i32 to index
    %494 = arith.index_cast %c0_i32_258 : i32 to index
    %495 = memref.load %arg1[%493, %494] : memref<16x8xi32, #tpu.memory_space<smem>>
    %c0_i32_259 = arith.constant 0 : i32
    %c63_i32_260 = arith.constant 63 : i32
    %496 = arith.maxsi %c0_i32_259, %495 : i32
    %497 = arith.minsi %c63_i32_260, %496 : i32
    %498 = arith.index_cast %497 : i32 to index
    %c0_261 = arith.constant 0 : index
    %499 = vector.load %arg2[%498, %c0_261] : memref<64x32xf32, #tpu.memory_space<vmem>>, vector<1x32xf32>
    %500 = arith.addf %492, %499 : vector<1x32xf32>
    %c1_i32_262 = arith.constant 1 : i32
    %501 = arith.index_cast %491 : i32 to index
    %502 = arith.index_cast %c1_i32_262 : i32 to index
    %503 = memref.load %arg1[%501, %502] : memref<16x8xi32, #tpu.memory_space<smem>>
    %c0_i32_263 = arith.constant 0 : i32
    %c63_i32_264 = arith.constant 63 : i32
    %504 = arith.maxsi %c0_i32_263, %503 : i32
    %505 = arith.minsi %c63_i32_264, %504 : i32
    %506 = arith.index_cast %505 : i32 to index
    %c0_265 = arith.constant 0 : index
    %507 = vector.load %arg2[%506, %c0_265] : memref<64x32xf32, #tpu.memory_space<vmem>>, vector<1x32xf32>
    %508 = arith.addf %500, %507 : vector<1x32xf32>
    %c2_i32_266 = arith.constant 2 : i32
    %509 = arith.index_cast %491 : i32 to index
    %510 = arith.index_cast %c2_i32_266 : i32 to index
    %511 = memref.load %arg1[%509, %510] : memref<16x8xi32, #tpu.memory_space<smem>>
    %c0_i32_267 = arith.constant 0 : i32
    %c63_i32_268 = arith.constant 63 : i32
    %512 = arith.maxsi %c0_i32_267, %511 : i32
    %513 = arith.minsi %c63_i32_268, %512 : i32
    %514 = arith.index_cast %513 : i32 to index
    %c0_269 = arith.constant 0 : index
    %515 = vector.load %arg2[%514, %c0_269] : memref<64x32xf32, #tpu.memory_space<vmem>>, vector<1x32xf32>
    %516 = arith.addf %508, %515 : vector<1x32xf32>
    %c3_i32_270 = arith.constant 3 : i32
    %517 = arith.index_cast %491 : i32 to index
    %518 = arith.index_cast %c3_i32_270 : i32 to index
    %519 = memref.load %arg1[%517, %518] : memref<16x8xi32, #tpu.memory_space<smem>>
    %c0_i32_271 = arith.constant 0 : i32
    %c63_i32_272 = arith.constant 63 : i32
    %520 = arith.maxsi %c0_i32_271, %519 : i32
    %521 = arith.minsi %c63_i32_272, %520 : i32
    %522 = arith.index_cast %521 : i32 to index
    %c0_273 = arith.constant 0 : index
    %523 = vector.load %arg2[%522, %c0_273] : memref<64x32xf32, #tpu.memory_space<vmem>>, vector<1x32xf32>
    %524 = arith.addf %516, %523 : vector<1x32xf32>
    %c4_i32_274 = arith.constant 4 : i32
    %525 = arith.index_cast %491 : i32 to index
    %526 = arith.index_cast %c4_i32_274 : i32 to index
    %527 = memref.load %arg1[%525, %526] : memref<16x8xi32, #tpu.memory_space<smem>>
    %c0_i32_275 = arith.constant 0 : i32
    %c63_i32_276 = arith.constant 63 : i32
    %528 = arith.maxsi %c0_i32_275, %527 : i32
    %529 = arith.minsi %c63_i32_276, %528 : i32
    %530 = arith.index_cast %529 : i32 to index
    %c0_277 = arith.constant 0 : index
    %531 = vector.load %arg2[%530, %c0_277] : memref<64x32xf32, #tpu.memory_space<vmem>>, vector<1x32xf32>
    %532 = arith.addf %524, %531 : vector<1x32xf32>
    %c5_i32_278 = arith.constant 5 : i32
    %533 = arith.index_cast %491 : i32 to index
    %534 = arith.index_cast %c5_i32_278 : i32 to index
    %535 = memref.load %arg1[%533, %534] : memref<16x8xi32, #tpu.memory_space<smem>>
    %c0_i32_279 = arith.constant 0 : i32
    %c63_i32_280 = arith.constant 63 : i32
    %536 = arith.maxsi %c0_i32_279, %535 : i32
    %537 = arith.minsi %c63_i32_280, %536 : i32
    %538 = arith.index_cast %537 : i32 to index
    %c0_281 = arith.constant 0 : index
    %539 = vector.load %arg2[%538, %c0_281] : memref<64x32xf32, #tpu.memory_space<vmem>>, vector<1x32xf32>
    %540 = arith.addf %532, %539 : vector<1x32xf32>
    %c6_i32_282 = arith.constant 6 : i32
    %541 = arith.index_cast %491 : i32 to index
    %542 = arith.index_cast %c6_i32_282 : i32 to index
    %543 = memref.load %arg1[%541, %542] : memref<16x8xi32, #tpu.memory_space<smem>>
    %c0_i32_283 = arith.constant 0 : i32
    %c63_i32_284 = arith.constant 63 : i32
    %544 = arith.maxsi %c0_i32_283, %543 : i32
    %545 = arith.minsi %c63_i32_284, %544 : i32
    %546 = arith.index_cast %545 : i32 to index
    %c0_285 = arith.constant 0 : index
    %547 = vector.load %arg2[%546, %c0_285] : memref<64x32xf32, #tpu.memory_space<vmem>>, vector<1x32xf32>
    %548 = arith.addf %540, %547 : vector<1x32xf32>
    %c7_i32_286 = arith.constant 7 : i32
    %549 = arith.index_cast %491 : i32 to index
    %550 = arith.index_cast %c7_i32_286 : i32 to index
    %551 = memref.load %arg1[%549, %550] : memref<16x8xi32, #tpu.memory_space<smem>>
    %c0_i32_287 = arith.constant 0 : i32
    %c63_i32_288 = arith.constant 63 : i32
    %552 = arith.maxsi %c0_i32_287, %551 : i32
    %553 = arith.minsi %c63_i32_288, %552 : i32
    %554 = arith.index_cast %553 : i32 to index
    %c0_289 = arith.constant 0 : index
    %555 = vector.load %arg2[%554, %c0_289] : memref<64x32xf32, #tpu.memory_space<vmem>>, vector<1x32xf32>
    %556 = arith.addf %548, %555 : vector<1x32xf32>
    %c8_i32_290 = arith.constant 8 : i32
    %cst_291 = arith.constant 1.250000e-01 : f32
    %557 = vector.broadcast %cst_291 : f32 to vector<1x32xf32>
    %558 = arith.mulf %556, %557 : vector<1x32xf32>
    %c7 = arith.constant 7 : index
    %c0_292 = arith.constant 0 : index
    %559 = vector.load %arg8[%c7, %c0_292] : memref<8x32xf32, #tpu.memory_space<vmem>>, vector<1x32xf32>
    tpu.vector_store %arg8[%c7, %c0_292], %558 {strides = array<i32>} : memref<8x32xf32, #tpu.memory_space<vmem>>, vector<1x32xf32>,
    %c0_293 = arith.constant 0 : index
    %c0_294 = arith.constant 0 : index
    %560 = vector.load %arg8[%c0_293, %c0_294] : memref<8x32xf32, #tpu.memory_space<vmem>>, vector<8x32xf32>
    %561 = arith.truncf %560 : vector<8x32xf32> to vector<8x32xbf16>
    %c0_295 = arith.constant 0 : index
    %c0_296 = arith.constant 0 : index
    %562 = vector.load %arg3[%c0_295, %c0_296] : memref<32x32xbf16, #tpu.memory_space<vmem>>, vector<32x32xbf16>
    %cst_297 = arith.constant dense<0.000000e+00> : vector<8x32xf32>
    %563 = tpu.matmul %561, %562, %cst_297 {dimension_numbers = #tpu.dot_dimension_numbers<[1], [0], [0], [1], [0, 0, 1, 1], [], []>} : vector<8x32xbf16>, vector<32x32xbf16>, vector<8x32xf32> -> vector<8x32xf32>
    %c0_298 = arith.constant 0 : index
    %c0_299 = arith.constant 0 : index
    %564 = vector.load %arg4[%c0_298, %c0_299] : memref<1x32xf32, #tpu.memory_space<vmem>>, vector<1x32xf32>
    %565 = vector.broadcast %564 : vector<1x32xf32> to vector<8x32xf32>
    %566 = arith.addf %563, %565 : vector<8x32xf32>
    %cst_300 = arith.constant 0.000000e+00 : f32
    %567 = vector.broadcast %cst_300 : f32 to vector<8x32xf32>
    %568 = arith.maximumf %566, %567 : vector<8x32xf32>
    %569 = arith.truncf %568 : vector<8x32xf32> to vector<8x32xbf16>
    %c0_301 = arith.constant 0 : index
    %c0_302 = arith.constant 0 : index
    %570 = vector.load %arg5[%c0_301, %c0_302] : memref<32x2xbf16, #tpu.memory_space<vmem>>, vector<32x2xbf16>
    %cst_303 = arith.constant dense<0.000000e+00> : vector<8x2xf32>
    %571 = tpu.matmul %569, %570, %cst_303 {dimension_numbers = #tpu.dot_dimension_numbers<[1], [0], [0], [1], [0, 0, 1, 1], [], []>} : vector<8x32xbf16>, vector<32x2xbf16>, vector<8x2xf32> -> vector<8x2xf32>
    %c0_304 = arith.constant 0 : index
    %c0_305 = arith.constant 0 : index
    %572 = vector.load %arg6[%c0_304, %c0_305] : memref<1x2xf32, #tpu.memory_space<vmem>>, vector<1x2xf32>
    %573 = vector.broadcast %572 : vector<1x2xf32> to vector<8x2xf32>
    %574 = arith.addf %571, %573 : vector<8x2xf32>
    %cst_306 = arith.constant dense<0xFF800000> : vector<8xf32>
    %575 = vector.multi_reduction <maximumf>, %574, %cst_306 [1] : vector<8x2xf32> to vector<8xf32>
    %576 = vector.shape_cast %575 : vector<8xf32> to vector<8x1xf32>
    %577 = vector.broadcast %576 : vector<8x1xf32> to vector<8x2xf32>
    %578 = arith.subf %574, %577 : vector<8x2xf32>
    %579 = math.exp %578 : vector<8x2xf32>
    %cst_307 = arith.constant dense<0.000000e+00> : vector<8xf32>
    %580 = vector.multi_reduction <add>, %579, %cst_307 [1] : vector<8x2xf32> to vector<8xf32>
    %581 = vector.shape_cast %580 : vector<8xf32> to vector<8x1xf32>
    %582 = math.log %581 : vector<8x1xf32>
    %583 = vector.broadcast %582 : vector<8x1xf32> to vector<8x2xf32>
    %584 = arith.subf %578, %583 : vector<8x2xf32>
    %c0_308 = arith.constant 0 : index
    %c0_309 = arith.constant 0 : index
    %585 = vector.load %arg7[%c0_308, %c0_309] : memref<8x2xf32, #tpu.memory_space<vmem>>, vector<8x2xf32>
    tpu.vector_store %arg7[%c0_308, %c0_309], %584 {strides = array<i32>} : memref<8x2xf32, #tpu.memory_space<vmem>>, vector<8x2xf32>,
    return
  }
  func.func @transform_0(%arg0: i32, %arg1: memref<16x8xi32, #tpu.memory_space<smem>>) -> (i32, i32) {
    %c0_i32 = arith.constant 0 : i32
    %c0_i32_0 = arith.constant 0 : i32
    %c0_i32_1 = arith.constant 0 : i32
    return %c0_i32, %c0_i32_0 : i32, i32
  }
  func.func @transform_1(%arg0: i32, %arg1: memref<16x8xi32, #tpu.memory_space<smem>>) -> (i32, i32) {
    %c0_i32 = arith.constant 0 : i32
    %c0_i32_0 = arith.constant 0 : i32
    %c0_i32_1 = arith.constant 0 : i32
    return %c0_i32, %c0_i32_0 : i32, i32
  }
  func.func @transform_2(%arg0: i32, %arg1: memref<16x8xi32, #tpu.memory_space<smem>>) -> (i32, i32) {
    %c0_i32 = arith.constant 0 : i32
    %c0_i32_0 = arith.constant 0 : i32
    %c0_i32_1 = arith.constant 0 : i32
    return %c0_i32, %c0_i32_0 : i32, i32
  }
  func.func @transform_3(%arg0: i32, %arg1: memref<16x8xi32, #tpu.memory_space<smem>>) -> (i32, i32) {
    %c0_i32 = arith.constant 0 : i32
    %c0_i32_0 = arith.constant 0 : i32
    %c0_i32_1 = arith.constant 0 : i32
    return %c0_i32, %c0_i32_0 : i32, i32
  }
  func.func @transform_4(%arg0: i32, %arg1: memref<16x8xi32, #tpu.memory_space<smem>>) -> (i32, i32) {
    %c0_i32 = arith.constant 0 : i32
    %c0_i32_0 = arith.constant 0 : i32
    %c0_i32_1 = arith.constant 0 : i32
    return %c0_i32, %c0_i32_0 : i32, i32
  }
  func.func @transform_5(%arg0: i32, %arg1: memref<16x8xi32, #tpu.memory_space<smem>>) -> (i32, i32) {
    %c0_i32 = arith.constant 0 : i32
    %c0_i32_0 = arith.constant 0 : i32
    return %arg0, %c0_i32 : i32, i32
  }
}

</mosaic_0001>

<bundles_post_ra>
// kernel: tpu_custom_call.1
= control target key start
LH: loop header
LB: loop body
LE: loop exit
PB: predicated region body
PF: predicated region fallthrough
CT: control target
= control target key end

     0   :  { %s2150_s0 = inlined_call_operand.vmem [shape: s32[16,8], index: 0, kind: input, shape index: {}]   ;;  %s2151_s1 = inlined_call_operand.vmem [shape: f32[64,32], index: 1, kind: input, shape index: {}]   ;;  %s2152_s2 = inlined_call_operand.vmem [shape: bf16[32,32], index: 2, kind: input, shape index: {}]   ;;  %s2153_s3 = inlined_call_operand.vmem [shape: f32[1,32], index: 3, kind: input, shape index: {}]   ;;  %s2154_s4 = inlined_call_operand.vmem [shape: bf16[32,2], index: 4, kind: input, shape index: {}]   ;;  %s2155_s5 = inlined_call_operand.vmem [shape: f32[1,2], index: 5, kind: input, shape index: {}]   ;;  %s2156_s6 = inlined_call_operand.vmem [shape: f32[16,2], index: 6, kind: output, shape index: {}]  }
   0x1   :  { %s11_s23 = sshll.u32 %s2150_s0, 4  ;;  %s12_s23 = int_to_ptr.vmem [resolvable:$true] %s11_s23 }
   0x2   :  { %s1603_s24 = scalar_lea.vmem %s12_s23, 256  ;;  %p1608_p1 = scmp.lt.s32.totalorder %s12_s23, %s12_s23 }
   0x3   :  { %p1604_p0 = scmp.ne.s32.totalorder %s12_s23, %s1603_s24  ;;  %p1609_p2 = scmp.lt.s32.totalorder %s1603_s24, %s1603_s24 }
   0x5   :  { %p1610_p3 = por %p1609_p2, %p1608_p1 }
   0x7   :  { %p1611_p4 = pnand %p1610_p3, %p1604_p0 }
   0x9   :  { %1614 = shalt.err (!%p1611_p4)  }
   0xa   :  { %s1625_s25 = smov [#allocation4]  }
   0xb   :  { %14 = dma.vmem_to_smem %s12_s23, 256, %s1625_s25, [#allocation3] }
   0xc   :  { %1619 = dma.done.wait [#allocation3], 256 }
   0xd   :  { %1620 = vsyncadd [#allocation3], 4294967040 }
   0xe   :  { %16 = sfence }
   0xf   :  { %s1666_s26 = smov 0  }
  0x10 LB: > { %s1672_s0 = sadd.s32 4294967295, %s1623_s26   ;;  %p1071_p5 = scmp.ge.s32.totalorder %s1623_s26, 1  ;;  %s1623_s26 = sphi %s1666_s26, %s22_s26  }
  0x11   : > { %p184_p6 = scmp.lt.s32.totalorder %s1623_s26, 3 }
  0x13   : > { %p185_p7 = pnand %p1071_p5, %p184_p6 }
  0x14   : > { %v1595_v0 = vld [vmem:[%s2152_s2] sm:$0xff] (!%p185_p7)   ;;  %v1626_v1 = vmov (!%p185_p7), 0.0   ;;  %v1596_v2 = vld [vmem:[%s2152_s2 + $0x8] sm:$0xff] (!%p185_p7)   ;;  %vm1627_vm0 = vmmov (!%p185_p7), 0   ;;  %s1686_s7 = sshll.u32 (!%p185_p7), %s1672_s0, 10  ;;  %vm285_vm1 = vcmask (!%p185_p7), 253952  }
  0x15   : > { %188 = sbr.rel (%p185_p7) target bundleno = 1024 (0x400), region = 40  ;;  %1568 = vmatprep.subr.bf16.mxu0 (!%p185_p7), %v1626_v1  ;;  %1576 = vmatprep.subr.bf16.mxu1 (!%p185_p7), %v1626_v1  ;;  %s213_s8 = sld [smem:[#allocation4 + %s1686_s7]] (!%p185_p7)  ;;  %vm837_vm2 = vcmask (!%p185_p7), 261120   ;;  %vm949_vm3 = vcmask (!%p185_p7), 15360  }
  0x16   : > { %1569 = vmatpush3.bf16.msra.mxu0 (!%p185_p7), %v1595_v0  ;;  %1572 = vmatprep.mubr.msk.bf16.mxu0 (!%p185_p7), %vm1627_vm0, %v1626_v1  ;;  %s221_s9 = sadd.s32 (!%p185_p7), 1, %s1686_s7  ;;  %s230_s11 = sadd.s32 (!%p185_p7), 2, %s1686_s7 }
  0x17   : > { %1570 = vmatprep.subr.bf16.mxu0 (!%p185_p7), %v1626_v1  ;;  %1580 = vmatprep.mubr.msk.bf16.mxu1 (!%p185_p7), %vm1627_vm0, %v1626_v1  ;;  %s222_s10 = sld [smem:[#allocation4 + %s221_s9]] (!%p185_p7)  ;;  %s239_s13 = sadd.s32 (!%p185_p7), 3, %s1686_s7 }
  0x18   : > { %s231_s12 = sld [smem:[#allocation4 + %s230_s11]] (!%p185_p7)  ;;  %s248_s15 = sadd.s32 (!%p185_p7), 4, %s1686_s7 }
  0x19   : > { %s240_s14 = sld [smem:[#allocation4 + %s239_s13]] (!%p185_p7)  ;;  %s257_s17 = sadd.s32 (!%p185_p7), 5, %s1686_s7 }
  0x1a   : > { %1571 = vmatpush3.bf16.msra.mxu0 (!%p185_p7), %v1596_v2  ;;  %s1695_s16 = sld [smem:[#allocation4 + %s248_s15]] (!%p185_p7)  ;;  %s266_s19 = sadd.s32 (!%p185_p7), 6, %s1686_s7 }
  0x1b   : > { %s1698_s18 = sld [smem:[#allocation4 + %s257_s17]] (!%p185_p7)  ;;  %p214_p8 = scmp.gt.s32.totalorder (!%p185_p7), %s213_s8, 0 }
  0x1c   : > { %p1075_p9 = scmp.lt.s32.totalorder %s213_s8, 63  ;;  %s267_s15 = sld [smem:[#allocation4 + %s266_s19]] }
  0x1d   : > { %p223_p10 = scmp.gt.s32.totalorder %s222_s10, 0  ;;  %p1080_p11 = scmp.lt.s32.totalorder %s222_s10, 63 }
  0x1e   : > { %s2158_s8 = smov (!%p214_p8, %s213_s8), 0  ;;  %p232_p12 = scmp.gt.s32.totalorder %s231_s12, 0 }
  0x1f   : > { %s2160_s10 = smov (!%p223_p10, %s222_s10), 0  ;;  %s2162_s8 = smov (!%p1075_p9, %s2158_s8), 63 }
  0x20   : > { %s2164_s10 = smov (!%p1080_p11, %s2160_s10), 63  ;;  %s218_s22 = scalar_lea.vmem %s2151_s1, %s2162_s8 }
  0x21   : > { %s227_s25 = scalar_lea.vmem %s2151_s1, %s2164_s10  ;;  %p1085_p13 = scmp.lt.s32.totalorder %s231_s12, 63  ;;  %v219_v3 = vld [vmem:[%s218_s22] sm:$0x1] }
  0x22   : > { %s2166_s12 = smov (!%p232_p12, %s231_s12), 0  ;;  %p241_p0 = scmp.gt.s32.totalorder %s240_s14, 0  ;;  %v228_v4 = vld [vmem:[%s227_s25] sm:$0x1] }
  0x23   : > { %p1090_p1 = scmp.lt.s32.totalorder %s240_s14, 63  ;;  %s2168_s12 = smov (!%p1085_p13, %s2166_s12), 63  ;;  %v229_v5 = vadd.f32 %v228_v4, %v219_v3 }
  0x24   : > { %s2170_s14 = smov (!%p241_p0, %s240_s14), 0  ;;  %s236_s29 = scalar_lea.vmem %s2151_s1, %s2168_s12 }
  0x25   : > { %p250_p2 = scmp.gt.s32.totalorder %s1695_s16, 0  ;;  %s2172_s14 = smov (!%p1090_p1, %s2170_s14), 63  ;;  %v237_v6 = vld [vmem:[%s236_s29] sm:$0x1] }
  0x26   : > { %s245_s10 = scalar_lea.vmem %s2151_s1, %s2172_s14  ;;  %p1095_p3 = scmp.lt.s32.totalorder %s1695_s16, 63  ;;  %v238_v7 = vadd.f32 %v237_v6, %v229_v5 }
  0x27   : > { %s251_s30 = scalar_select %p250_p2, %s1695_s16, 0  ;;  %v246_v8 = vld [vmem:[%s245_s10] sm:$0x1] }
  0x28   : > { %p259_p4 = scmp.gt.s32.totalorder %s1698_s18, 0  ;;  %p1100_p5 = scmp.lt.s32.totalorder %s1698_s18, 63  ;;  %v247_v9 = vadd.f32 %v246_v8, %v238_v7 }
  0x29   : > { %s2174_s30 = smov (!%p1095_p3, %s251_s30), 63  ;;  %s275_s17 = sadd.s32 7, %s1686_s7 }
  0x2a   : > { %s2176_s18 = smov (!%p259_p4, %s1698_s18), 0  ;;  %s254_s13 = scalar_lea.vmem %s2151_s1, %s2174_s30 }
  0x2b   : > { %s2178_s18 = smov (!%p1100_p5, %s2176_s18), 63  ;;  %s1726_s20 = sadd.s32 128, %s1686_s7  ;;  %v255_v10 = vld [vmem:[%s254_s13] sm:$0x1] }
  0x2c   : > { %s263_s21 = scalar_lea.vmem %s2151_s1, %s2178_s18  ;;  %s276_s22 = sld [smem:[#allocation4 + %s275_s17]]  ;;  %v256_v11 = vadd.f32 %v255_v10, %v247_v9 }
  0x2d   : > { %s289_s23 = sld [smem:[#allocation4 + %s1726_s20]]  ;;  %s297_s24 = sadd.s32 1, %s1726_s20  ;;  %v264_v12 = vld [vmem:[%s263_s21] sm:$0x1] }
  0x2e   : > { %s1733_s25 = sld [smem:[#allocation4 + %s297_s24]]  ;;  %s306_s19 = sadd.s32 2, %s1726_s20  ;;  %v265_v13 = vadd.f32 %v264_v12, %v256_v11 }
  0x2f   : > { %p268_p6 = scmp.gt.s32.totalorder %s267_s15, 0  ;;  %p1105_p7 = scmp.lt.s32.totalorder %s267_s15, 63 }
  0x30   : > { %s1736_s27 = sld [smem:[#allocation4 + %s306_s19]]  ;;  %s315_s28 = sadd.s32 3, %s1726_s20 }
  0x31   : > { %s2180_s15 = smov (!%p268_p6, %s267_s15), 0  ;;  %s333_s19 = sadd.s32 5, %s1726_s20 }
  0x32   : > { %p277_p8 = scmp.gt.s32.totalorder %s276_s22, 0  ;;  %p1110_p9 = scmp.lt.s32.totalorder %s276_s22, 63 }
  0x33   : > { %s2182_s15 = smov (!%p1105_p7, %s2180_s15), 63  ;;  %p290_p10 = scmp.gt.s32.totalorder %s289_s23, 0 }
  0x34   : > { %s2184_s22 = smov (!%p277_p8, %s276_s22), 0  ;;  %s272_s30 = scalar_lea.vmem %s2151_s1, %s2182_s15 }
  0x35   : > { %v273_v14 = vld [vmem:[%s272_s30] sm:$0x1]  ;;  %s2186_s22 = smov (!%p1110_p9, %s2184_s22), 63  ;;  %p1116_p11 = scmp.lt.s32.totalorder %s289_s23, 63 }
  0x36   : > { %v274_v15 = vadd.f32 %v273_v14, %v265_v13  ;;  %s291_s8 = scalar_select %p290_p10, %s289_s23, 0 }
  0x37   : > { %s281_s11 = scalar_lea.vmem %s2151_s1, %s2186_s22  ;;  %p299_p12 = scmp.gt.s32.totalorder %s1733_s25, 0 }
  0x38   : > { %v282_v16 = vld [vmem:[%s281_s11] sm:$0x1]  ;;  %p1121_p13 = scmp.lt.s32.totalorder %s1733_s25, 63  ;;  %s2188_s8 = smov (!%p1116_p11, %s291_s8), 63 }
  0x39   : > { %v283_v17 = vadd.f32 %v282_v16, %v274_v15  ;;  %s2190_s25 = smov (!%p299_p12, %s1733_s25), 0  ;;  %s294_s15 = scalar_lea.vmem %s2151_s1, %s2188_s8 }
  0x3a   : > { %p308_p0 = scmp.gt.s32.totalorder %s1736_s27, 0  ;;  %s2192_s25 = smov (!%p1121_p13, %s2190_s25), 63  ;;  %v295_v19 = vld [vmem:[%s294_s15] sm:$0x1] }
  0x3b   : > { %v284_v18 = vmul.f32 0.125, %v283_v17  ;;  %s303_s21 = scalar_lea.vmem %s2151_s1, %s2192_s25  ;;  %p1126_p1 = scmp.lt.s32.totalorder %s1736_s27, 63 }
  0x3c   : > { %s309_s17 = scalar_select %p308_p0, %s1736_s27, 0  ;;  %v304_v20 = vld [vmem:[%s303_s21] sm:$0x1] }
  0x3d   : > { %286 = vst.msk [vmem:[#allocation2] sm:$0x1] %vm285_vm1, %v284_v18  ;;  %s316_s22 = sld [smem:[#allocation4 + %s315_s28]]  ;;  %s324_s23 = sadd.s32 4, %s1726_s20  ;;  %v305_v21 = vadd.f32 %v304_v20, %v295_v19 }
  0x3e   : > { %s2194_s17 = smov (!%p1126_p1, %s309_s17), 63  ;;  %s325_s24 = sld [smem:[#allocation4 + %s324_s23]] }
  0x3f   : > { %s312_s30 = scalar_lea.vmem %s2151_s1, %s2194_s17  ;;  %s1765_s8 = sld [smem:[#allocation4 + %s333_s19]] }
  0x40   : > { %s342_s9 = sadd.s32 6, %s1726_s20  ;;  %s351_s10 = sadd.s32 7, %s1726_s20  ;;  %v313_v22 = vld [vmem:[%s312_s30] sm:$0x1] }
  0x41   : > { %s1769_s25 = sld [smem:[#allocation4 + %s342_s9]]  ;;  %s1774_s28 = sadd.s32 256, %s1686_s7  ;;  %v314_v23 = vadd.f32 %v313_v22, %v305_v21 }
  0x42   : > { %s1771_s27 = sld [smem:[#allocation4 + %s351_s10]]  ;;  %s1777_s11 = sadd.s32 384, %s1686_s7 }
  0x43   : > { %p317_p2 = scmp.gt.s32.totalorder %s316_s22, 0  ;;  %p1131_p3 = scmp.lt.s32.totalorder %s316_s22, 63 }
  0x44   : > { %p326_p4 = scmp.gt.s32.totalorder %s325_s24, 0  ;;  %p1136_p5 = scmp.lt.s32.totalorder %s325_s24, 63 }
  0x45   : > { %s2196_s22 = smov (!%p317_p2, %s316_s22), 0  ;;  %p335_p6 = scmp.gt.s32.totalorder %s1765_s8, 0 }
  0x46   : > { %s2198_s22 = smov (!%p1131_p3, %s2196_s22), 63  ;;  %s2200_s24 = smov (!%p326_p4, %s325_s24), 0 }
  0x47   : > { %s321_s13 = scalar_lea.vmem %s2151_s1, %s2198_s22  ;;  %s2202_s24 = smov (!%p1136_p5, %s2200_s24), 63 }
  0x48   : > { %v322_v24 = vld [vmem:[%s321_s13] sm:$0x1]  ;;  %s336_s15 = scalar_select %p335_p6, %s1765_s8, 0 }
  0x49   : > { %v323_v25 = vadd.f32 %v322_v24, %v314_v23  ;;  %s330_s16 = scalar_lea.vmem %s2151_s1, %s2202_s24  ;;  %p1141_p7 = scmp.lt.s32.totalorder %s1765_s8, 63 }
  0x4a   : > { %v331_v26 = vld [vmem:[%s330_s16] sm:$0x1]  ;;  %p344_p8 = scmp.gt.s32.totalorder %s1769_s25, 0  ;;  %p1146_p9 = scmp.lt.s32.totalorder %s1769_s25, 63 }
  0x4b   : > { %v332_v27 = vadd.f32 %v331_v26, %v323_v25  ;;  %s2204_s15 = smov (!%p1141_p7, %s336_s15), 63  ;;  %p353_p10 = scmp.gt.s32.totalorder %s1771_s27, 0 }
  0x4c   : > { %s2206_s25 = smov (!%p344_p8, %s1769_s25), 0  ;;  %s339_s23 = scalar_lea.vmem %s2151_s1, %s2204_s15 }
  0x4d   : > { %v340_v28 = vld [vmem:[%s339_s23] sm:$0x1]  ;;  %s2208_s25 = smov (!%p1146_p9, %s2206_s25), 63  ;;  %p1151_p11 = scmp.lt.s32.totalorder %s1771_s27, 63 }
  0x4e   : > { %v341_v29 = vadd.f32 %v340_v28, %v332_v27  ;;  %s354_s24 = scalar_select %p353_p10, %s1771_s27, 0 }
  0x4f   : > { %s348_s29 = scalar_lea.vmem %s2151_s1, %s2208_s25  ;;  %s364_s30 = sld [smem:[#allocation4 + %s1774_s28]] }
  0x50   : > { %v349_v30 = vld [vmem:[%s348_s29] sm:$0x1]  ;;  %s372_s8 = sadd.s32 1, %s1774_s28  ;;  %s2210_s24 = smov (!%p1151_p11, %s354_s24), 63 }
  0x51   : > { %v350_v31 = vadd.f32 %v349_v30, %v341_v29  ;;  %s373_s9 = sld [smem:[#allocation4 + %s372_s8]]  ;;  %s381_s10 = sadd.s32 2, %s1774_s28 }
  0x52   : > { %s357_s13 = scalar_lea.vmem %s2151_s1, %s2210_s24  ;;  %s382_s15 = sld [smem:[#allocation4 + %s381_s10]] }
  0x53   : > { %v358_v32 = vld [vmem:[%s357_s13] sm:$0x1]  ;;  %s390_s17 = sadd.s32 3, %s1774_s28  ;;  %s399_s14 = sadd.s32 4, %s1774_s28 }
  0x54   : > { %v359_v33 = vadd.f32 %v358_v32, %v350_v31  ;;  %s391_s25 = sld [smem:[#allocation4 + %s390_s17]]  ;;  %s408_s16 = sadd.s32 5, %s1774_s28 }
  0x55   : > { %s1808_s27 = sld [smem:[#allocation4 + %s399_s14]]  ;;  %p365_p12 = scmp.gt.s32.totalorder %s364_s30, 0 }
  0x56   : > { %p1157_p13 = scmp.lt.s32.totalorder %s364_s30, 63  ;;  %v360_v34 = vmul.f32 0.125, %v359_v33  ;;  %s417_s21 = sadd.s32 6, %s1774_s28 }
  0x57   : > { %s2212_s30 = smov (!%p365_p12, %s364_s30), 0  ;;  %p374_p0 = scmp.gt.s32.totalorder %s373_s9, 0 }
  0x58   : > { %361 = vst.msk [vmem:[#allocation2 + $0x1] sm:$0x1] %vm285_vm1, %v360_v34  ;;  %p1162_p1 = scmp.lt.s32.totalorder %s373_s9, 63  ;;  %s2214_s30 = smov (!%p1157_p13, %s2212_s30), 63 }
  0x59   : > { %s2216_s9 = smov (!%p374_p0, %s373_s9), 0  ;;  %s369_s24 = scalar_lea.vmem %s2151_s1, %s2214_s30 }
  0x5a   : > { %p383_p2 = scmp.gt.s32.totalorder %s382_s15, 0  ;;  %s2218_s9 = smov (!%p1162_p1, %s2216_s9), 63  ;;  %v370_v35 = vld [vmem:[%s369_s24] sm:$0x1] }
  0x5b   : > { %s378_s8 = scalar_lea.vmem %s2151_s1, %s2218_s9  ;;  %p1167_p3 = scmp.lt.s32.totalorder %s382_s15, 63 }
  0x5c   : > { %s384_s19 = scalar_select %p383_p2, %s382_s15, 0  ;;  %v379_v36 = vld [vmem:[%s378_s8] sm:$0x1] }
  0x5d   : > { %p392_p4 = scmp.gt.s32.totalorder %s391_s25, 0  ;;  %p1172_p5 = scmp.lt.s32.totalorder %s391_s25, 63  ;;  %v380_v37 = vadd.f32 %v379_v36, %v370_v35 }
  0x5e   : > { %s2220_s19 = smov (!%p1167_p3, %s384_s19), 63  ;;  %p401_p6 = scmp.gt.s32.totalorder %s1808_s27, 0 }
  0x5f   : > { %s2222_s25 = smov (!%p392_p4, %s391_s25), 0  ;;  %s387_s20 = scalar_lea.vmem %s2151_s1, %s2220_s19 }
  0x60   : > { %s2224_s25 = smov (!%p1172_p5, %s2222_s25), 63  ;;  %v388_v38 = vld [vmem:[%s387_s20] sm:$0x1]  ;;  %p1177_p7 = scmp.lt.s32.totalorder %s1808_s27, 63 }
  0x61   : > { %s402_s12 = scalar_select %p401_p6, %s1808_s27, 0  ;;  %v389_v39 = vadd.f32 %v388_v38, %v380_v37 }
  0x62   : > { %s396_s15 = scalar_lea.vmem %s2151_s1, %s2224_s25  ;;  %s409_s17 = sld [smem:[#allocation4 + %s408_s16]] }
  0x63   : > { %s418_s14 = sld [smem:[#allocation4 + %s417_s21]]  ;;  %s2226_s12 = smov (!%p1177_p7, %s402_s12), 63  ;;  %v397_v40 = vld [vmem:[%s396_s15] sm:$0x1] }
  0x64   : > { %s426_s22 = sadd.s32 7, %s1774_s28  ;;  %s1830_s23 = sld [smem:[#allocation4 + %s1777_s11]]  ;;  %v398_v41 = vadd.f32 %v397_v40, %v389_v39 }
  0x65   : > { %s405_s18 = scalar_lea.vmem %s2151_s1, %s2226_s12  ;;  %s427_s29 = sld [smem:[#allocation4 + %s426_s22]] }
  0x66   : > { %s447_s8 = sadd.s32 1, %s1777_s11  ;;  %s456_s10 = sadd.s32 2, %s1777_s11  ;;  %v406_v42 = vld [vmem:[%s405_s18] sm:$0x1] }
  0x67   : > { %s1837_s30 = sld [smem:[#allocation4 + %s447_s8]]  ;;  %v407_v43 = vadd.f32 %v406_v42, %v398_v41  ;;  %s465_s8 = sadd.s32 3, %s1777_s11 }
  0x68   : > { %s1839_s20 = sld [smem:[#allocation4 + %s456_s10]]  ;;  %p410_p8 = scmp.gt.s32.totalorder %s409_s17, 0 }
  0x69   : > { %p1182_p9 = scmp.lt.s32.totalorder %s409_s17, 63  ;;  %p419_p10 = scmp.gt.s32.totalorder %s418_s14, 0 }
  0x6a   : > { %p1187_p11 = scmp.lt.s32.totalorder %s418_s14, 63  ;;  %s2228_s17 = smov (!%p410_p8, %s409_s17), 0 }
  0x6b   : > { %s2230_s14 = smov (!%p419_p10, %s418_s14), 0  ;;  %s2232_s17 = smov (!%p1182_p9, %s2228_s17), 63 }
  0x6c   : > { %s2234_s14 = smov (!%p1187_p11, %s2230_s14), 63  ;;  %s414_s27 = scalar_lea.vmem %s2151_s1, %s2232_s17 }
  0x6d   : > { %p428_p12 = scmp.gt.s32.totalorder %s427_s29, 0  ;;  %v415_v44 = vld [vmem:[%s414_s27] sm:$0x1]  ;;  %s423_s12 = scalar_lea.vmem %s2151_s1, %s2234_s14 }
  0x6e   : > { %p1192_p13 = scmp.lt.s32.totalorder %s427_s29, 63  ;;  %v416_v45 = vadd.f32 %v415_v44, %v407_v43  ;;  %v424_v46 = vld [vmem:[%s423_s12] sm:$0x1]  ;;  %p440_p0 = scmp.gt.s32.totalorder %s1830_s23, 0 }
  0x6f   : > { %s2236_s29 = smov (!%p428_p12, %s427_s29), 0  ;;  %p1198_p1 = scmp.lt.s32.totalorder %s1830_s23, 63 }
  0x70   : > { %v425_v47 = vadd.f32 %v424_v46, %v416_v45  ;;  %s2238_s29 = smov (!%p1192_p13, %s2236_s29), 63  ;;  %s2240_s23 = smov (!%p440_p0, %s1830_s23), 0 }
  0x71   : > { %s432_s15 = scalar_lea.vmem %s2151_s1, %s2238_s29  ;;  %p449_p2 = scmp.gt.s32.totalorder %s1837_s30, 0 }
  0x72   : > { %v433_v48 = vld [vmem:[%s432_s15] sm:$0x1]  ;;  %s2242_s23 = smov (!%p1198_p1, %s2240_s23), 63  ;;  %p1203_p3 = scmp.lt.s32.totalorder %s1837_s30, 63 }
  0x73   : > { %v434_v49 = vadd.f32 %v433_v48, %v425_v47  ;;  %s450_s17 = scalar_select %p449_p2, %s1837_s30, 0 }
  0x74   : > { %s444_s24 = scalar_lea.vmem %s2151_s1, %s2242_s23  ;;  %p458_p4 = scmp.gt.s32.totalorder %s1839_s20, 0 }
  0x75   : > { %v435_v50 = vmul.f32 0.125, %v434_v49  ;;  %p1208_p5 = scmp.lt.s32.totalorder %s1839_s20, 63  ;;  %s2244_s17 = smov (!%p1203_p3, %s450_s17), 63  ;;  %v445_v51 = vld [vmem:[%s444_s24] sm:$0x1] }
  0x76   : > { %s2246_s20 = smov (!%p458_p4, %s1839_s20), 0  ;;  %s453_s29 = scalar_lea.vmem %s2151_s1, %s2244_s17 }
  0x77   : > { %436 = vst.msk [vmem:[#allocation2 + $0x2] sm:$0x1] %vm285_vm1, %v435_v50  ;;  %s2248_s20 = smov (!%p1208_p5, %s2246_s20), 63  ;;  %s466_s10 = sld [smem:[#allocation4 + %s465_s8]]  ;;  %v454_v52 = vld [vmem:[%s453_s29] sm:$0x1] }
  0x78   : > { %s474_s28 = sadd.s32 4, %s1777_s11  ;;  %s462_s30 = scalar_lea.vmem %s2151_s1, %s2248_s20  ;;  %v455_v53 = vadd.f32 %v454_v52, %v445_v51 }
  0x79   : > { %s475_s27 = sld [smem:[#allocation4 + %s474_s28]]  ;;  %s483_s16 = sadd.s32 5, %s1777_s11  ;;  %v463_v54 = vld [vmem:[%s462_s30] sm:$0x1] }
  0x7a   : > { %s492_s21 = sadd.s32 6, %s1777_s11  ;;  %s484_s12 = sld [smem:[#allocation4 + %s483_s16]]  ;;  %v464_v55 = vadd.f32 %v463_v54, %v455_v53 }
  0x7b   : > { %s1873_s9 = sld [smem:[#allocation4 + %s492_s21]]  ;;  %s501_s13 = sadd.s32 7, %s1777_s11 }
  0x7c   : > { %s1877_s15 = sadd.s32 512, %s1686_s7  ;;  %s1879_s17 = sld [smem:[#allocation4 + %s501_s13]] }
  0x7d   : > { %s1882_s14 = sld [smem:[#allocation4 + %s1877_s15]]  ;;  %p467_p6 = scmp.gt.s32.totalorder %s466_s10, 0 }
  0x7e   : > { %p1213_p7 = scmp.lt.s32.totalorder %s466_s10, 63  ;;  %s531_s13 = sadd.s32 2, %s1877_s15 }
  0x7f   : > { %p476_p8 = scmp.gt.s32.totalorder %s475_s27, 0  ;;  %p1218_p9 = scmp.lt.s32.totalorder %s475_s27, 63 }
  0x80   : > { %s2250_s10 = smov (!%p467_p6, %s466_s10), 0  ;;  %p485_p10 = scmp.gt.s32.totalorder %s484_s12, 0 }
  0x81   : > { %s2252_s27 = smov (!%p476_p8, %s475_s27), 0  ;;  %s2254_s10 = smov (!%p1213_p7, %s2250_s10), 63 }
  0x82   : > { %s2256_s27 = smov (!%p1218_p9, %s2252_s27), 63  ;;  %s471_s22 = scalar_lea.vmem %s2151_s1, %s2254_s10 }
  0x83   : > { %v472_v56 = vld [vmem:[%s471_s22] sm:$0x1]  ;;  %s480_s18 = scalar_lea.vmem %s2151_s1, %s2256_s27  ;;  %p1223_p11 = scmp.lt.s32.totalorder %s484_s12, 63 }
  0x84   : > { %v473_v57 = vadd.f32 %v472_v56, %v464_v55  ;;  %v481_v58 = vld [vmem:[%s480_s18] sm:$0x1]  ;;  %s2258_s12 = smov (!%p485_p10, %s484_s12), 0  ;;  %p494_p12 = scmp.gt.s32.totalorder %s1873_s9, 0 }
  0x85   : > { %p1228_p13 = scmp.lt.s32.totalorder %s1873_s9, 63  ;;  %s2260_s12 = smov (!%p1223_p11, %s2258_s12), 63 }
  0x86   : > { %v482_v59 = vadd.f32 %v481_v58, %v473_v57  ;;  %s2262_s9 = smov (!%p494_p12, %s1873_s9), 0  ;;  %s489_s10 = scalar_lea.vmem %s2151_s1, %s2260_s12 }
  0x87   : > { %p503_p0 = scmp.gt.s32.totalorder %s1879_s17, 0  ;;  %v490_v60 = vld [vmem:[%s489_s10] sm:$0x1]  ;;  %s2264_s9 = smov (!%p1228_p13, %s2262_s9), 63 }
  0x88   : > { %v491_v61 = vadd.f32 %v490_v60, %v482_v59  ;;  %s498_s30 = scalar_lea.vmem %s2151_s1, %s2264_s9  ;;  %p1233_p1 = scmp.lt.s32.totalorder %s1879_s17, 63 }
  0x89   : > { %s504_s28 = scalar_select %p503_p0, %s1879_s17, 0  ;;  %v499_v62 = vld [vmem:[%s498_s30] sm:$0x1] }
  0x8a   : > { %p515_p2 = scmp.gt.s32.totalorder %s1882_s14, 0  ;;  %p1239_p3 = scmp.lt.s32.totalorder %s1882_s14, 63  ;;  %v500_v63 = vadd.f32 %v499_v62, %v491_v61 }
  0x8b   : > { %s2266_s28 = smov (!%p1233_p1, %s504_s28), 63  ;;  %s522_s12 = sadd.s32 1, %s1877_s15 }
  0x8c   : > { %s2268_s14 = smov (!%p515_p2, %s1882_s14), 0  ;;  %s507_s21 = scalar_lea.vmem %s2151_s1, %s2266_s28 }
  0x8d   : > { %v508_v0 = vld [vmem:[%s507_s21] sm:$0x1]  ;;  %s2270_s14 = smov (!%p1239_p3, %s2268_s14), 63  ;;  %s523_s9 = sld [smem:[#allocation4 + %s522_s12]] }
  0x8e   : > { %v509_v2 = vadd.f32 %v508_v0, %v500_v63  ;;  %s519_s20 = scalar_lea.vmem %s2151_s1, %s2270_s14  ;;  %s532_s22 = sld [smem:[#allocation4 + %s531_s13]] }
  0x8f   : > { %s540_s24 = sadd.s32 3, %s1877_s15  ;;  %s549_s19 = sadd.s32 4, %s1877_s15  ;;  %v520_v4 = vld [vmem:[%s519_s20] sm:$0x1] }
  0x90   : > { %v510_v3 = vmul.f32 0.125, %v509_v2  ;;  %s541_s18 = sld [smem:[#allocation4 + %s540_s24]]  ;;  %s558_s8 = sadd.s32 5, %s1877_s15 }
  0x91   : > { %s1915_s29 = sld [smem:[#allocation4 + %s549_s19]]  ;;  %s567_s10 = sadd.s32 6, %s1877_s15 }
  0x92   : > { %511 = vst.msk [vmem:[#allocation2 + $0x3] sm:$0x1] %vm285_vm1, %v510_v3  ;;  %s1920_s28 = sld [smem:[#allocation4 + %s558_s8]]  ;;  %s576_s8 = sadd.s32 7, %s1877_s15 }
  0x93   : > { %s1922_s23 = sld [smem:[#allocation4 + %s567_s10]]  ;;  %p524_p4 = scmp.gt.s32.totalorder %s523_s9, 0 }
  0x94   : > { %p1244_p5 = scmp.lt.s32.totalorder %s523_s9, 63  ;;  %p533_p6 = scmp.gt.s32.totalorder %s532_s22, 0 }
  0x95   : > { %p1249_p7 = scmp.lt.s32.totalorder %s532_s22, 63  ;;  %s2272_s9 = smov (!%p524_p4, %s523_s9), 0 }
  0x96   : > { %s2274_s22 = smov (!%p533_p6, %s532_s22), 0  ;;  %s2276_s9 = smov (!%p1244_p5, %s2272_s9), 63 }
  0x97   : > { %s2278_s22 = smov (!%p1249_p7, %s2274_s22), 63  ;;  %s528_s30 = scalar_lea.vmem %s2151_s1, %s2276_s9 }
  0x98   : > { %p542_p8 = scmp.gt.s32.totalorder %s541_s18, 0  ;;  %s537_s21 = scalar_lea.vmem %s2151_s1, %s2278_s22  ;;  %v529_v5 = vld [vmem:[%s528_s30] sm:$0x1] }
  0x99   : > { %p1254_p9 = scmp.lt.s32.totalorder %s541_s18, 63  ;;  %p551_p10 = scmp.gt.s32.totalorder %s1915_s29, 0  ;;  %v530_v6 = vadd.f32 %v529_v5, %v520_v4  ;;  %v538_v7 = vld [vmem:[%s537_s21] sm:$0x1] }
  0x9a   : > { %s2280_s18 = smov (!%p542_p8, %s541_s18), 0  ;;  %p1259_p11 = scmp.lt.s32.totalorder %s1915_s29, 63 }
  0x9b   : > { %s2282_s18 = smov (!%p1254_p9, %s2280_s18), 63  ;;  %s2284_s29 = smov (!%p551_p10, %s1915_s29), 0  ;;  %v539_v8 = vadd.f32 %v538_v7, %v530_v6  ;;  %v1597_v7 = vld [vmem:[%s2154_s4] sm:$0xff]  }
  0x9c   : > { %s546_s13 = scalar_lea.vmem %s2151_s1, %s2282_s18  ;;  %p560_p12 = scmp.gt.s32.totalorder %s1920_s28, 0  ;;  %1577 = vmatpush3.bf16.msra.mxu1 %v1597_v7 }
  0x9d   : > { %s2286_s29 = smov (!%p1259_p11, %s2284_s29), 63  ;;  %p1264_p13 = scmp.lt.s32.totalorder %s1920_s28, 63  ;;  %v547_v9 = vld [vmem:[%s546_s13] sm:$0x1]  ;;  %1578 = vmatprep.subr.bf16.mxu1 %v1626_v1 }
  0x9e   : > { %s561_s17 = scalar_select %p560_p12, %s1920_s28, 0  ;;  %v548_v10 = vadd.f32 %v547_v9, %v539_v8  ;;  %v1598_v8 = vld [vmem:[%s2154_s4 + $0x8] sm:$0xff]   ;;  %v1402_v9 = vld [vmem:[%s2153_s3] ss:$0 sm:$0xff] }
  0x9f   : > { %s555_s22 = scalar_lea.vmem %s2151_s1, %s2286_s29  ;;  %p569_p0 = scmp.gt.s32.totalorder %s1922_s23, 0  ;;  %v1406_v1 = vld [vmem:[%s2155_s5] ss:$0 sm:$0xff] }
  0xa0   : > { %p1269_p1 = scmp.lt.s32.totalorder %s1922_s23, 63  ;;  %s2288_s17 = smov (!%p1264_p13, %s561_s17), 63  ;;  %v556_v11 = vld [vmem:[%s555_s22] sm:$0x1]  ;;  %1579 = vmatpush3.bf16.msra.mxu1 %v1598_v8 }
  0xa1   : > { %s2290_s23 = smov (!%p569_p0, %s1922_s23), 0  ;;  %s564_s18 = scalar_lea.vmem %s2151_s1, %s2288_s17  ;;  %v557_v12 = vadd.f32 %v556_v11, %v548_v10 }
  0xa2   : > { %s2292_s23 = smov (!%p1269_p1, %s2290_s23), 63  ;;  %s577_s10 = sld [smem:[#allocation4 + %s576_s8]]  ;;  %v565_v13 = vld [vmem:[%s564_s18] sm:$0x1] }
  0xa3   : > { %s1950_s14 = sadd.s32 640, %s1686_s7  ;;  %s573_s29 = scalar_lea.vmem %s2151_s1, %s2292_s23  ;;  %v566_v14 = vadd.f32 %v565_v13, %v557_v12 }
  0xa4   : > { %s589_s28 = sld [smem:[#allocation4 + %s1950_s14]]  ;;  %s597_s27 = sadd.s32 1, %s1950_s14  ;;  %v574_v15 = vld [vmem:[%s573_s29] sm:$0x1] }
  0xa5   : > { %s606_s16 = sadd.s32 2, %s1950_s14  ;;  %s598_s15 = sld [smem:[#allocation4 + %s597_s27]]  ;;  %v575_v16 = vadd.f32 %v574_v15, %v566_v14 }
  0xa6   : > { %s1958_s21 = sld [smem:[#allocation4 + %s606_s16]]  ;;  %s615_s12 = sadd.s32 3, %s1950_s14 }
  0xa7   : > { %s624_s9 = sadd.s32 4, %s1950_s14  ;;  %s1962_s13 = sld [smem:[#allocation4 + %s615_s12]] }
  0xa8   : > { %s1964_s17 = sld [smem:[#allocation4 + %s624_s9]]  ;;  %p578_p2 = scmp.gt.s32.totalorder %s577_s10, 0 }
  0xa9   : > { %p1274_p3 = scmp.lt.s32.totalorder %s577_s10, 63  ;;  %s633_s12 = sadd.s32 5, %s1950_s14 }
  0xaa   : > { %p590_p4 = scmp.gt.s32.totalorder %s589_s28, 0  ;;  %p1280_p5 = scmp.lt.s32.totalorder %s589_s28, 63 }
  0xab   : > { %s2294_s10 = smov (!%p578_p2, %s577_s10), 0  ;;  %p599_p6 = scmp.gt.s32.totalorder %s598_s15, 0 }
  0xac   : > { %s2296_s28 = smov (!%p590_p4, %s589_s28), 0  ;;  %s2298_s10 = smov (!%p1274_p3, %s2294_s10), 63 }
  0xad   : > { %s2300_s28 = smov (!%p1280_p5, %s2296_s28), 63  ;;  %s582_s20 = scalar_lea.vmem %s2151_s1, %s2298_s10 }
  0xae   : > { %v583_v17 = vld [vmem:[%s582_s20] sm:$0x1]  ;;  %s594_s19 = scalar_lea.vmem %s2151_s1, %s2300_s28  ;;  %p1285_p7 = scmp.lt.s32.totalorder %s598_s15, 63 }
  0xaf   : > { %v584_v18 = vadd.f32 %v583_v17, %v575_v16  ;;  %s2302_s15 = smov (!%p599_p6, %s598_s15), 0  ;;  %p608_p8 = scmp.gt.s32.totalorder %s1958_s21, 0  ;;  %v595_v20 = vld [vmem:[%s594_s19] sm:$0x1] }
  0xb0   : > { %p1290_p9 = scmp.lt.s32.totalorder %s1958_s21, 63  ;;  %s2304_s15 = smov (!%p1285_p7, %s2302_s15), 63 }
  0xb1   : > { %v585_v19 = vmul.f32 0.125, %v584_v18  ;;  %s2306_s21 = smov (!%p608_p8, %s1958_s21), 0  ;;  %s603_s10 = scalar_lea.vmem %s2151_s1, %s2304_s15 }
  0xb2   : > { %p617_p10 = scmp.gt.s32.totalorder %s1962_s13, 0  ;;  %s2308_s21 = smov (!%p1290_p9, %s2306_s21), 63  ;;  %v604_v21 = vld [vmem:[%s603_s10] sm:$0x1] }
  0xb3   : > { %586 = vst.msk [vmem:[#allocation2 + $0x4] sm:$0x1] %vm285_vm1, %v585_v19  ;;  %s612_s28 = scalar_lea.vmem %s2151_s1, %s2308_s21  ;;  %p1295_p11 = scmp.lt.s32.totalorder %s1962_s13, 63  ;;  %v605_v22 = vadd.f32 %v604_v21, %v595_v20 }
  0xb4   : > { %s618_s25 = scalar_select %p617_p10, %s1962_s13, 0  ;;  %v613_v23 = vld [vmem:[%s612_s28] sm:$0x1] }
  0xb5   : > { %p626_p12 = scmp.gt.s32.totalorder %s1964_s17, 0  ;;  %p1300_p13 = scmp.lt.s32.totalorder %s1964_s17, 63  ;;  %v614_v24 = vadd.f32 %v613_v23, %v605_v22 }
  0xb6   : > { %s2310_s25 = smov (!%p1295_p11, %s618_s25), 63  ;;  %s634_s9 = sld [smem:[#allocation4 + %s633_s12]] }
  0xb7   : > { %s2312_s17 = smov (!%p626_p12, %s1964_s17), 0  ;;  %s621_s15 = scalar_lea.vmem %s2151_s1, %s2310_s25 }
  0xb8   : > { %s2314_s17 = smov (!%p1300_p13, %s2312_s17), 63  ;;  %s642_s23 = sadd.s32 6, %s1950_s14  ;;  %v622_v25 = vld [vmem:[%s621_s15] sm:$0x1] }
  0xb9   : > { %s630_s11 = scalar_lea.vmem %s2151_s1, %s2314_s17  ;;  %s643_s20 = sld [smem:[#allocation4 + %s642_s23]]  ;;  %v623_v26 = vadd.f32 %v622_v25, %v614_v24 }
  0xba   : > { %s651_s22 = sadd.s32 7, %s1950_s14  ;;  %s1998_s24 = sadd.s32 768, %s1686_s7  ;;  %v631_v27 = vld [vmem:[%s630_s11] sm:$0x1] }
  0xbb   : > { %s652_s19 = sld [smem:[#allocation4 + %s651_s22]]  ;;  %s672_s8 = sadd.s32 1, %s1998_s24  ;;  %v632_v28 = vadd.f32 %v631_v27, %v623_v26 }
  0xbc   : > { %s2001_s18 = sld [smem:[#allocation4 + %s1998_s24]]  ;;  %s681_s10 = sadd.s32 2, %s1998_s24 }
  0xbd   : > { %s2005_s25 = sld [smem:[#allocation4 + %s672_s8]]  ;;  %p635_p0 = scmp.gt.s32.totalorder %s634_s9, 0 }
  0xbe   : > { %s2007_s30 = sld [smem:[#allocation4 + %s681_s10]]  ;;  %p1305_p1 = scmp.lt.s32.totalorder %s634_s9, 63 }
  0xbf   : > { %p644_p2 = scmp.gt.s32.totalorder %s643_s20, 0  ;;  %p1310_p3 = scmp.lt.s32.totalorder %s643_s20, 63 }
  0xc0   : > { %s2316_s9 = smov (!%p635_p0, %s634_s9), 0  ;;  %s690_s8 = sadd.s32 3, %s1998_s24 }
  0xc1   : > { %s2318_s20 = smov (!%p644_p2, %s643_s20), 0  ;;  %s2320_s9 = smov (!%p1305_p1, %s2316_s9), 63 }
  0xc2   : > { %s2322_s20 = smov (!%p1310_p3, %s2318_s20), 63  ;;  %s639_s29 = scalar_lea.vmem %s2151_s1, %s2320_s9 }
  0xc3   : > { %p653_p4 = scmp.gt.s32.totalorder %s652_s19, 0  ;;  %v640_v29 = vld [vmem:[%s639_s29] sm:$0x1]  ;;  %s648_s16 = scalar_lea.vmem %s2151_s1, %s2322_s20 }
  0xc4   : > { %p1315_p5 = scmp.lt.s32.totalorder %s652_s19, 63  ;;  %v641_v30 = vadd.f32 %v640_v29, %v632_v28  ;;  %v649_v31 = vld [vmem:[%s648_s16] sm:$0x1]  ;;  %p665_p6 = scmp.gt.s32.totalorder %s2001_s18, 0 }
  0xc5   : > { %s2324_s19 = smov (!%p653_p4, %s652_s19), 0  ;;  %p1321_p7 = scmp.lt.s32.totalorder %s2001_s18, 63 }
  0xc6   : > { %v650_v32 = vadd.f32 %v649_v31, %v641_v30  ;;  %s2326_s19 = smov (!%p1315_p5, %s2324_s19), 63  ;;  %s2328_s18 = smov (!%p665_p6, %s2001_s18), 0 }
  0xc7   : > { %s657_s9 = scalar_lea.vmem %s2151_s1, %s2326_s19  ;;  %p674_p8 = scmp.gt.s32.totalorder %s2005_s25, 0 }
  0xc8   : > { %v658_v33 = vld [vmem:[%s657_s9] sm:$0x1]  ;;  %s2330_s18 = smov (!%p1321_p7, %s2328_s18), 63  ;;  %p1326_p9 = scmp.lt.s32.totalorder %s2005_s25, 63 }
  0xc9   : > { %v659_v34 = vadd.f32 %v658_v33, %v650_v32  ;;  %s675_s23 = scalar_select %p674_p8, %s2005_s25, 0 }
  0xca   : > { %s669_s11 = scalar_lea.vmem %s2151_s1, %s2330_s18  ;;  %p683_p10 = scmp.gt.s32.totalorder %s2007_s30, 0 }
  0xcb   : > { %v660_v35 = vmul.f32 0.125, %v659_v34  ;;  %p1331_p11 = scmp.lt.s32.totalorder %s2007_s30, 63  ;;  %s2332_s23 = smov (!%p1326_p9, %s675_s23), 63  ;;  %v670_v36 = vld [vmem:[%s669_s11] sm:$0x1] }
  0xcc   : > { %s2334_s30 = smov (!%p683_p10, %s2007_s30), 0  ;;  %s678_s19 = scalar_lea.vmem %s2151_s1, %s2332_s23 }
  0xcd   : > { %661 = vst.msk [vmem:[#allocation2 + $0x5] sm:$0x1] %vm285_vm1, %v660_v35  ;;  %s2336_s30 = smov (!%p1331_p11, %s2334_s30), 63  ;;  %s691_s10 = sld [smem:[#allocation4 + %s690_s8]]  ;;  %v679_v37 = vld [vmem:[%s678_s19] sm:$0x1] }
  0xce   : > { %s699_s14 = sadd.s32 4, %s1998_s24  ;;  %s687_s25 = scalar_lea.vmem %s2151_s1, %s2336_s30  ;;  %v680_v38 = vadd.f32 %v679_v37, %v670_v36 }
  0xcf   : > { %s700_s29 = sld [smem:[#allocation4 + %s699_s14]]  ;;  %s708_s28 = sadd.s32 5, %s1998_s24  ;;  %v688_v39 = vld [vmem:[%s687_s25] sm:$0x1] }
  0xd0   : > { %s717_s27 = sadd.s32 6, %s1998_s24  ;;  %s709_s16 = sld [smem:[#allocation4 + %s708_s28]]  ;;  %v689_v40 = vadd.f32 %v688_v39, %v680_v38 }
  0xd1   : > { %s2041_s15 = sld [smem:[#allocation4 + %s717_s27]]  ;;  %s726_s12 = sadd.s32 7, %s1998_s24 }
  0xd2   : > { %s2045_s9 = sadd.s32 896, %s1686_s7  ;;  %s2047_s23 = sld [smem:[#allocation4 + %s726_s12]] }
  0xd3   : > { %s2050_s21 = sld [smem:[#allocation4 + %s2045_s9]]  ;;  %p692_p12 = scmp.gt.s32.totalorder %s691_s10, 0 }
  0xd4   : > { %p1336_p13 = scmp.lt.s32.totalorder %s691_s10, 63  ;;  %s747_s27 = sadd.s32 1, %s2045_s9 }
  0xd5   : > { %p701_p0 = scmp.gt.s32.totalorder %s700_s29, 0  ;;  %p1341_p1 = scmp.lt.s32.totalorder %s700_s29, 63 }
  0xd6   : > { %s2338_s10 = smov (!%p692_p12, %s691_s10), 0  ;;  %p710_p2 = scmp.gt.s32.totalorder %s709_s16, 0 }
  0xd7   : > { %s2340_s29 = smov (!%p701_p0, %s700_s29), 0  ;;  %s2342_s10 = smov (!%p1336_p13, %s2338_s10), 63 }
  0xd8   : > { %s2344_s29 = smov (!%p1341_p1, %s2340_s29), 63  ;;  %s696_s30 = scalar_lea.vmem %s2151_s1, %s2342_s10 }
  0xd9   : > { %v697_v41 = vld [vmem:[%s696_s30] sm:$0x1]  ;;  %s705_s20 = scalar_lea.vmem %s2151_s1, %s2344_s29  ;;  %p1346_p3 = scmp.lt.s32.totalorder %s709_s16, 63 }
  0xda   : > { %v698_v42 = vadd.f32 %v697_v41, %v689_v40  ;;  %v706_v43 = vld [vmem:[%s705_s20] sm:$0x1]  ;;  %s2346_s16 = smov (!%p710_p2, %s709_s16), 0  ;;  %p719_p4 = scmp.gt.s32.totalorder %s2041_s15, 0 }
  0xdb   : > { %p1351_p5 = scmp.lt.s32.totalorder %s2041_s15, 63  ;;  %s2348_s16 = smov (!%p1346_p3, %s2346_s16), 63 }
  0xdc   : > { %v707_v44 = vadd.f32 %v706_v43, %v698_v42  ;;  %s2350_s15 = smov (!%p719_p4, %s2041_s15), 0  ;;  %s714_s8 = scalar_lea.vmem %s2151_s1, %s2348_s16 }
  0xdd   : > { %p728_p6 = scmp.gt.s32.totalorder %s2047_s23, 0  ;;  %v715_v45 = vld [vmem:[%s714_s8] sm:$0x1]  ;;  %s2352_s15 = smov (!%p1351_p5, %s2350_s15), 63 }
  0xde   : > { %v716_v46 = vadd.f32 %v715_v45, %v707_v44  ;;  %s723_s17 = scalar_lea.vmem %s2151_s1, %s2352_s15  ;;  %p1356_p7 = scmp.lt.s32.totalorder %s2047_s23, 63 }
  0xdf   : > { %s729_s10 = scalar_select %p728_p6, %s2047_s23, 0  ;;  %v724_v47 = vld [vmem:[%s723_s17] sm:$0x1] }
  0xe0   : > { %p740_p8 = scmp.gt.s32.totalorder %s2050_s21, 0  ;;  %p1362_p9 = scmp.lt.s32.totalorder %s2050_s21, 63  ;;  %v725_v48 = vadd.f32 %v724_v47, %v716_v46 }
  0xe1   : > { %s2354_s10 = smov (!%p1356_p7, %s729_s10), 63  ;;  %s748_s16 = sld [smem:[#allocation4 + %s747_s27]] }
  0xe2   : > { %s2356_s21 = smov (!%p740_p8, %s2050_s21), 0  ;;  %s732_s28 = scalar_lea.vmem %s2151_s1, %s2354_s10 }
  0xe3   : > { %v733_v49 = vld [vmem:[%s732_s28] sm:$0x1]  ;;  %s2358_s21 = smov (!%p1362_p9, %s2356_s21), 63  ;;  %s756_s15 = sadd.s32 2, %s2045_s9 }
  0xe4   : > { %v734_v50 = vadd.f32 %v733_v49, %v725_v48  ;;  %s744_s7 = scalar_lea.vmem %s2151_s1, %s2358_s21  ;;  %s757_s24 = sld [smem:[#allocation4 + %s756_s15]] }
  0xe5   : > { %s765_s30 = sadd.s32 3, %s2045_s9  ;;  %s774_s13 = sadd.s32 4, %s2045_s9  ;;  %v745_v52 = vld [vmem:[%s744_s7] sm:$0x1] }
  0xe6   : > { %v735_v51 = vmul.f32 0.125, %v734_v50  ;;  %s766_s11 = sld [smem:[#allocation4 + %s765_s30]]  ;;  %s783_s22 = sadd.s32 5, %s2045_s9 }
  0xe7   : > { %s2083_s20 = sld [smem:[#allocation4 + %s774_s13]]  ;;  %s792_s19 = sadd.s32 6, %s2045_s9 }
  0xe8   : > { %736 = vst.msk [vmem:[#allocation2 + $0x6] sm:$0x1] %vm285_vm1, %v735_v51  ;;  %s2088_s8 = sld [smem:[#allocation4 + %s783_s22]]  ;;  %p749_p10 = scmp.gt.s32.totalorder %s748_s16, 0 }
  0xe9   : > { %s2090_s10 = sld [smem:[#allocation4 + %s792_s19]]  ;;  %p1367_p11 = scmp.lt.s32.totalorder %s748_s16, 63 }
  0xea   : > { %p758_p12 = scmp.gt.s32.totalorder %s757_s24, 0  ;;  %p1372_p13 = scmp.lt.s32.totalorder %s757_s24, 63 }
  0xeb   : > { %s2360_s16 = smov (!%p749_p10, %s748_s16), 0  ;;  %p206_p10 = scmp.lt.s32.totalorder %s1672_s0, 1 }
  0xec   : > { %s2362_s24 = smov (!%p758_p12, %s757_s24), 0  ;;  %s2364_s16 = smov (!%p1367_p11, %s2360_s16), 63 }
  0xed   : > { %s2366_s24 = smov (!%p1372_p13, %s2362_s24), 63  ;;  %s753_s18 = scalar_lea.vmem %s2151_s1, %s2364_s16 }
  0xee   : > { %p767_p0 = scmp.gt.s32.totalorder %s766_s11, 0  ;;  %s762_s29 = scalar_lea.vmem %s2151_s1, %s2366_s24  ;;  %v754_v53 = vld [vmem:[%s753_s18] sm:$0x1] }
  0xef   : > { %p1377_p1 = scmp.lt.s32.totalorder %s766_s11, 63  ;;  %p776_p2 = scmp.gt.s32.totalorder %s2083_s20, 0  ;;  %v755_v54 = vadd.f32 %v754_v53, %v745_v52  ;;  %v763_v55 = vld [vmem:[%s762_s29] sm:$0x1] }
  0xf0   : > { %s2368_s11 = smov (!%p767_p0, %s766_s11), 0  ;;  %p1382_p3 = scmp.lt.s32.totalorder %s2083_s20, 63 }
  0xf1   : > { %s2370_s11 = smov (!%p1377_p1, %s2368_s11), 63  ;;  %s2372_s20 = smov (!%p776_p2, %s2083_s20), 0  ;;  %v764_v56 = vadd.f32 %v763_v55, %v755_v54 }
  0xf2   : > { %s771_s16 = scalar_lea.vmem %s2151_s1, %s2370_s11  ;;  %p785_p4 = scmp.gt.s32.totalorder %s2088_s8, 0 }
  0xf3   : > { %s2374_s20 = smov (!%p1382_p3, %s2372_s20), 63  ;;  %p1387_p5 = scmp.lt.s32.totalorder %s2088_s8, 63  ;;  %v772_v57 = vld [vmem:[%s771_s16] sm:$0x1] }
  0xf4   : > { %s786_s15 = scalar_select %p785_p4, %s2088_s8, 0  ;;  %v773_v58 = vadd.f32 %v772_v57, %v764_v56 }
  0xf5   : > { %s780_s7 = scalar_lea.vmem %s2151_s1, %s2374_s20  ;;  %p794_p6 = scmp.gt.s32.totalorder %s2090_s10, 0 }
  0xf6   : > { %p1392_p7 = scmp.lt.s32.totalorder %s2090_s10, 63  ;;  %s2376_s15 = smov (!%p1387_p5, %s786_s15), 63  ;;  %v781_v59 = vld [vmem:[%s780_s7] sm:$0x1] }
  0xf7   : > { %s2378_s10 = smov (!%p794_p6, %s2090_s10), 0  ;;  %s801_s24 = sadd.s32 7, %s2045_s9  ;;  %v782_v60 = vadd.f32 %v781_v59, %v773_v58 }
  0xf8   : > { %s2380_s10 = smov (!%p1392_p7, %s2378_s10), 63  ;;  %s789_s11 = scalar_lea.vmem %s2151_s1, %s2376_s15 }
  0xf9   : > { %s802_s22 = sld [smem:[#allocation4 + %s801_s24]]  ;;  %v790_v61 = vld [vmem:[%s789_s11] sm:$0x1]  ;;  %s798_s20 = scalar_lea.vmem %s2151_s1, %s2380_s10 }
  0xfa   : > { %v791_v62 = vadd.f32 %v790_v61, %v782_v60  ;;  %v799_v63 = vld [vmem:[%s798_s20] sm:$0x1]  ;;  %s2386_s0 = smov (!%p206_p10, %s1672_s0), 1 }
  0xfb   : > { %s1072_s15 = sshll.u32 %s2386_s0, 3 }
  0xfc   : > { %v800_v0 = vadd.f32 %v799_v63, %v791_v62  ;;  %s209_s7 = scalar_lea.vmem %s2156_s6, %s1072_s15 }
  0xff   : > { %p803_p8 = scmp.gt.s32.totalorder %s802_s22, 0  ;;  %p1397_p9 = scmp.lt.s32.totalorder %s802_s22, 63 }
 0x101   : > { %s2382_s22 = smov (!%p803_p8, %s802_s22), 0 }
 0x102   : > { %s2384_s22 = smov (!%p1397_p9, %s2382_s22), 63 }
 0x103   : > { %s807_s14 = scalar_lea.vmem %s2151_s1, %s2384_s22 }
 0x104   : > { %v808_v2 = vld [vmem:[%s807_s14] sm:$0x1] }
 0x105   : > { %v809_v3 = vadd.f32 %v808_v2, %v800_v0 }
 0x107   : > { %v810_v4 = vmul.f32 0.125, %v809_v3 }
 0x109   : > { %811 = vst.msk [vmem:[#allocation2 + $0x7] sm:$0x1] %vm285_vm1, %v810_v4 }
 0x110   : > { %v812_v5 = vld [vmem:[#allocation2] sm:$0xff] }
 0x111   : > { %v813_v6 = vpack.c.bf16 %v812_v5, %v812_v5 }
 0x113   : > { %1573 = vmatmul.mubr.msk.bf16.vlgmr.msra.gmra.mrb[0].mxu0 %vm837_vm2, %v813_v6 }
 0x1e6   : > { %v875_v10 = vpop.f32.mrb[0].mxu0 }
 0x1e7   : > { %v876_v11 = vadd.f32 %v1402_v9, %v875_v10  ;;  %v1574_v12 = vpop.f32.mrb[1].mxu0 }
 0x1e8   : > { %v878_v13 = vpop.f32.mrb[2].mxu0 }
 0x1e9   : > { %v881_v14 = vmax.f32 %v876_v11, 0.0  ;;  %v1575_v15 = vpop.f32.mrb[3].mxu0 }
 0x1eb   : > { %v882_v16 = vpack.c.bf16 %v881_v14, %v881_v14 }
 0x1ed   : > { %1581 = vmatmul.mubr.msk.bf16.vlgmr.msra.gmra.mrb[0].mxu1 %vm837_vm2, %v882_v16 }
 0x2c0   : > { %v943_v17 = vpop.f32.mrb[0].mxu1 }
 0x2c1   : > { %v944_v18 = vadd.f32 %v1406_v1, %v943_v17  ;;  %v1582_v19 = vpop.f32.mrb[1].mxu1 }
 0x2c2   : > { %v946_v20 = vpop.f32.mrb[2].mxu1 }
 0x2c3   : > { %v1583_v21 = vpop.f32.mrb[3].mxu1  ;;  %v950_v22 = vsel %vm949_vm3, %v944_v18, -inf }
 0x2c4   : > { %951 = vmax.xlane.f32.xlu0 %v950_v22 }
 0x351   : > { %v952_v23 = vpop.xlane.xlu0 %951 }
 0x352   : > { %v953_v24 = vsub.f32 %v944_v18, %v952_v23 }
 0x354   : > { %v954_v25 = vmul.f32 1.442695, %v953_v24 }
 0x356   : > { %1599 = vpow2.f32 %v954_v25 }
 0x360   : > { %v1600_v26 = vpop.eup %1599 }
 0x361   : > { %v956_v27 = vsel %vm949_vm3, %v1600_v26, 0.0 }
 0x362   : > { %957 = vadd.xlane.f32.xlu0 %v956_v27 }
 0x3ef   : > { %v958_v28 = vpop.xlane.xlu0 %957 }
 0x3f0   : > { %1601 = vlog2.f32 %v958_v28 }
 0x3fa   : > { %v1602_v29 = vpop.eup %1601 }
 0x3fb   : > { %v960_v30 = vmul.f32 0.6931472, %v1602_v29 }
 0x3fd   : > { %v961_v31 = vsub.f32 %v953_v24, %v960_v30 }
 0x3ff   : > { %962 = vst.msk [vmem:[%s209_s7] sm:$0xff] %vm949_vm3, %v961_v31 }
 0x400 PF: > { %s22_s26 = sadd.s32 1, %s1623_s26  }
 0x401   : > { %p19_p11 = scmp.ge.s32.totalorder %s22_s26, 4  }
 0x403   :  { %21 = sbr.rel (!%p19_p11) target bundleno = 16 (0x10), region = 131 }

</bundles_post_ra>
